<compile_context>
chip_gen: v7x
topology: tpu7x:2x2x1
jax: 0.10.0
libtpu: 0.0.40
codegen_flags: <defaults>
</compile_context>

<pallas_src>
import math
import functools

import jax
import jax.numpy as jnp
from jax.experimental import pallas as pl
from jax.experimental.pallas import tpu as pltpu

# ----------------------------- config (small, consistent with the module) --------------
HIDDEN = 32            # bertConfig.hidden_size (= d_model)
NUM_HEADS = 4
HEAD_DIM = HIDDEN // NUM_HEADS
INTERMEDIATE = 64
NUM_LAYERS = 2
MAX_POS = 16
EMB_SIZES = [256, 256, 256, 256]   # hardcoded in MidiBert.__init__
N_TOKENS = [16, 20, 24, 28]        # len(e2w[key]) per class (synthetic)
VOCAB_OFFSETS = tuple(int(sum(N_TOKENS[:i])) for i in range(len(N_TOKENS)))
VOCAB_TOTAL = int(sum(N_TOKENS))
LN_EPS = 1e-12
NEG_INF = float(jnp.finfo(jnp.float32).min)

B, S = 2, 8


# ----------------------------- in-kernel helpers ---------------------------------------
def _layernorm(x, g, b):
    mu = jnp.mean(x, axis=-1, keepdims=True)
    var = jnp.mean(jnp.square(x - mu), axis=-1, keepdims=True)
    return (x - mu) * jax.lax.rsqrt(var + LN_EPS) * g + b


def _gelu(x):
    # TODO(synk): HF "gelu" is erf-based; tanh-approx GELU used for Mosaic-safe lowering.
    return 0.5 * x * (1.0 + jnp.tanh(0.7978845608028654 * (x + 0.044715 * x * x * x)))


def _idiv(x, d):
    """Integer divide a non-negative int32 vector by a static positive int."""
    if d > 0 and (d & (d - 1)) == 0:
        return jnp.right_shift(x, int(d).bit_length() - 1)
    return x // d


# ----------------------------- the fused kernel ----------------------------------------
def _midibert_kernel(ids_ref, mask_ref, tab_ref, misc_ref, w_ref, v_ref,
                     hs_ref, pool_ref, *,
                     bsz, seq, num_heads, head_dim, inter, pos_rows,
                     vocab_offsets, out_hidden):
    rows = bsz * seq
    hidden = num_heads * head_dim
    nrep = num_heads * rows
    num_layers = w_ref.shape[0]

    # ---- merged word embeddings + in_linear (folded): one multi-hot matmul ------------
    ids = ids_ref[...]                                            # [rows, 4] int32
    vtot = tab_ref.shape[0]
    iota_v = jax.lax.broadcasted_iota(jnp.int32, (rows, vtot), 1)
    multi = jnp.zeros((rows, vtot), jnp.float32)
    for i, off in enumerate(vocab_offsets):
        multi = multi + (ids[:, i:i + 1] + off == iota_v).astype(jnp.float32)

    pre = misc_ref[0:seq, :]                                      # pos + tok_type(0) + b_in
    if bsz > 1:
        pre = jnp.concatenate([pre] * bsz, axis=0)                # [rows, H]
    pool_w = misc_ref[pos_rows:pos_rows + hidden, :]              # [H, H]
    small = misc_ref[pos_rows + hidden:pos_rows + hidden + 3, :]  # pooler_b, emb_ln_g, emb_ln_b
    pool_b, eg, eb = small[0:1, :], small[1:2, :], small[2:3, :]

    x = pre + jnp.dot(multi, tab_ref[...], preferred_element_type=jnp.float32)
    h = _layernorm(x, eg, eb)                                     # BertEmbeddings LN (eval)
    if out_hidden:
        hs_ref[0] = h

    # ---- attention bias [nrep, nrep] and head-column mask [nrep, H] (layer-invariant) --
    ri = jax.lax.broadcasted_iota(jnp.int32, (nrep, nrep), 0)
    ci = jax.lax.broadcasted_iota(jnp.int32, (nrep, nrep), 1)
    same_group = _idiv(ri, seq) == _idiv(ci, seq)                 # same head AND same batch
    key_row = jnp.concatenate([mask_ref[...]] * num_heads, axis=1)  # [1, nrep]
    bias = jnp.where(jnp.logical_and(same_group, key_row > 0.0), 0.0, NEG_INF)

    rq = jax.lax.broadcasted_iota(jnp.int32, (nrep, hidden), 0)
    cq = jax.lax.broadcasted_iota(jnp.int32, (nrep, hidden), 1)
    head_mask = (_idiv(rq, rows) == _idiv(cq, head_dim)).astype(jnp.float32)

    # ---- encoder layers (static unroll) ------------------------------------------------
    for l in range(num_layers):
        wqkv = w_ref[l, 0:hidden, :]                              # [H, 3H] (1/sqrt(dh) folded)
        wo = w_ref[l, hidden:2 * hidden, 0:hidden]                # [H, H]
        wi = w_ref[l, 2 * hidden:3 * hidden, 0:inter]             # [H, I]
        wf = w_ref[l, 3 * hidden:3 * hidden + inter, 0:hidden]    # [I, H]
        vv = v_ref[l]                                             # [8, 3H] bias/LN blob
        bqkv = vv[0:1, :]
        bo, bi_, bf = vv[1:2, 0:hidden], vv[2:3, 0:inter], vv[3:4, 0:hidden]
        g1, b1 = vv[4:5, 0:hidden], vv[5:6, 0:hidden]
        g2, b2 = vv[6:7, 0:hidden], vv[7:8, 0:hidden]

        # --- self-attention: all heads in two matmuls via sublane replication ---
        qkv = jnp.dot(h, wqkv, preferred_element_type=jnp.float32) + bqkv   # [rows, 3H]
        q = qkv[:, 0:hidden]
        k = qkv[:, hidden:2 * hidden]
        v = qkv[:, 2 * hidden:3 * hidden]
        q_blk = jnp.concatenate([q] * num_heads, axis=0) * head_mask        # [nrep, H]
        k_rep = jnp.concatenate([k] * num_heads, axis=0)                     # [nrep, H]
        v_rep = jnp.concatenate([v] * num_heads, axis=0)                     # [nrep, H]

        s = jax.lax.dot_general(q_blk, k_rep, (((1,), (1,)), ((), ())),
                                preferred_element_type=jnp.float32) + bias   # [nrep, nrep]
        s = s - jnp.max(s, axis=-1, keepdims=True)
        p = jnp.exp(s)                                    # masked entries -> exactly 0
        p = p / jnp.sum(p, axis=-1, keepdims=True)
        ctx = jnp.dot(p, v_rep, preferred_element_type=jnp.float32) * head_mask  # [nrep, H]
        ctx_flat = ctx[0:rows, :]
        for hh in range(1, num_heads):
            ctx_flat = ctx_flat + ctx[hh * rows:(hh + 1) * rows, :]          # head re-merge
        attn = jnp.dot(ctx_flat, wo, preferred_element_type=jnp.float32) + bo
        h1 = _layernorm(h + attn, g1, b1)                 # dropout = identity (eval)

        # --- feed-forward ---
        ff = jnp.dot(h1, wi, preferred_element_type=jnp.float32) + bi_
        ff = _gelu(ff)
        ff = jnp.dot(ff, wf, preferred_element_type=jnp.float32) + bf
        h = _layernorm(h1 + ff, g2, b2)

        if out_hidden:
            hs_ref[l + 1] = h
        elif l == num_layers - 1:
            hs_ref[0] = h

    # ---- pooler: tanh(CLS @ Wp + bp); CLS rows gathered with static slices --------------
    cls = jnp.concatenate([h[b * seq:b * seq + 1, :] for b in range(bsz)], axis=0)
    pool_ref[...] = jnp.tanh(
        jnp.dot(cls, pool_w, preferred_element_type=jnp.float32) + pool_b)


# ----------------------------- parameters (deterministic, synthetic) -------------------
def init_params(key):
    keys = iter(jax.random.split(key, 64))

    def nrm(shape, scale=0.02):
        return jax.random.normal(next(keys), shape, jnp.float32) * scale

    params = {
        "tables": [nrm((n, e)) for n, e in zip(N_TOKENS, EMB_SIZES)],
        "w_in": nrm((sum(EMB_SIZES), HIDDEN)),
        "b_in": jnp.zeros((1, HIDDEN), jnp.float32),
        "pos_emb": nrm((MAX_POS, HIDDEN)),
        "tok_type": nrm((2, HIDDEN)),
        "emb_ln_g": jnp.ones((1, HIDDEN), jnp.float32),
        "emb_ln_b": jnp.zeros((1, HIDDEN), jnp.float32),
        "pooler_w": nrm((HIDDEN, HIDDEN)),
        "pooler_b": jnp.zeros((1, HIDDEN), jnp.float32),
        "layers": [],
    }
    for _ in range(NUM_LAYERS):
        params["layers"].append(dict(
            wq=nrm((HIDDEN, HIDDEN)), bq=jnp.zeros((1, HIDDEN), jnp.float32),
            wk=nrm((HIDDEN, HIDDEN)), bk=jnp.zeros((1, HIDDEN), jnp.float32),
            wv=nrm((HIDDEN, HIDDEN)), bv=jnp.zeros((1, HIDDEN), jnp.float32),
            wo=nrm((HIDDEN, HIDDEN)), bo=jnp.zeros((1, HIDDEN), jnp.float32),
            ln1_g=jnp.ones((1, HIDDEN), jnp.float32), ln1_b=jnp.zeros((1, HIDDEN), jnp.float32),
            wi=nrm((HIDDEN, INTERMEDIATE)), bi=jnp.zeros((1, INTERMEDIATE), jnp.float32),
            wf=nrm((INTERMEDIATE, HIDDEN)), bf=jnp.zeros((1, HIDDEN), jnp.float32),
            ln2_g=jnp.ones((1, HIDDEN), jnp.float32), ln2_b=jnp.zeros((1, HIDDEN), jnp.float32),
        ))
    return params


# ----------------------------- weight packing (run ONCE, outside jit) -------------------
def pack_params(params):
    inv_dh = 1.0 / math.sqrt(HEAD_DIM)
    h3 = 3 * HIDDEN

    # concat_i(sqrt(e_i)*T_i[id_i]) @ W_in  ==  multi_hot @ concat_i(sqrt(e_i)*T_i @ W_in_i)
    folded, off = [], 0
    for t, e in zip(params["tables"], EMB_SIZES):
        folded.append(math.sqrt(e) * (t @ params["w_in"][off:off + e, :]))
        off += e
    tab = jnp.concatenate(folded, axis=0)                          # [sum(n_tok), H]

    # misc blob: rows [0:MAX_POS) pre_bias, [MAX_POS:MAX_POS+H) pooler_w, then pb/eg/eb
    pre_full = params["pos_emb"] + params["tok_type"][0:1] + params["b_in"]
    misc = jnp.concatenate([pre_full, params["pooler_w"], params["pooler_b"],
                            params["emb_ln_g"], params["emb_ln_b"]], axis=0)

    def pad_row(v):
        out = jnp.zeros((1, h3), jnp.float32)
        return out.at[:, 0:v.shape[1]].set(v)

    wbs, vbs = [], []
    for l in params["layers"]:
        wqkv = jnp.concatenate([l["wq"] * inv_dh, l["wk"], l["wv"]], axis=1)   # [H, 3H]
        wblk = jnp.zeros((3 * HIDDEN + INTERMEDIATE, h3), jnp.float32)
        wblk = wblk.at[0:HIDDEN, :].set(wqkv)
        wblk = wblk.at[HIDDEN:2 * HIDDEN, 0:HIDDEN].set(l["wo"])
        wblk = wblk.at[2 * HIDDEN:3 * HIDDEN, 0:INTERMEDIATE].set(l["wi"])
        wblk = wblk.at[3 * HIDDEN:, 0:HIDDEN].set(l["wf"])
        wbs.append(wblk)

        bqkv = jnp.concatenate([l["bq"] * inv_dh, l["bk"], l["bv"]], axis=1)   # [1, 3H]
        vbs.append(jnp.concatenate(
            [pad_row(bqkv), pad_row(l["bo"]), pad_row(l["bi"]), pad_row(l["bf"]),
             pad_row(l["ln1_g"]), pad_row(l["ln1_b"]),
             pad_row(l["ln2_g"]), pad_row(l["ln2_b"])], axis=0))               # [8, 3H]

    return dict(tab=tab, misc=misc, wblob=jnp.stack(wbs), vblob=jnp.stack(vbs))


# ----------------------------- MidiBert.forward (jit-friendly, no packing inside) -------
def midibert_forward(packed, input_ids, attn_mask=None, output_hidden_states=True):
    bsz, seq, n_cls = input_ids.shape
    rows = bsz * seq
    ids2 = input_ids.reshape(rows, n_cls).astype(jnp.int32)
    if attn_mask is None:
        mask2 = jnp.ones((1, rows), jnp.float32)
    else:
        mask2 = attn_mask.reshape(1, rows).astype(jnp.float32)

    num_layers = packed["wblob"].shape[0]
    n_out = num_layers + 1 if output_hidden_states else 1

    vmem = pl.BlockSpec(memory_space=pltpu.MemorySpace.VMEM)
    kernel = functools.partial(
        _midibert_kernel, bsz=bsz, seq=seq, num_heads=NUM_HEADS, head_dim=HEAD_DIM,
        inter=INTERMEDIATE, pos_rows=MAX_POS, vocab_offsets=VOCAB_OFFSETS,
        out_hidden=output_hidden_states)

    hs, pooled = pl.pallas_call(
        kernel,
        out_shape=(jax.ShapeDtypeStruct((n_out, rows, HIDDEN), jnp.float32),
                   jax.ShapeDtypeStruct((bsz, HIDDEN), jnp.float32)),
        in_specs=[vmem] * 6,
        out_specs=(vmem, vmem),
    )(ids2, mask2, packed["tab"], packed["misc"], packed["wblob"], packed["vblob"])

    hs = hs.reshape(n_out, bsz, seq, HIDDEN)
    out = {"last_hidden_state": hs[-1], "pooler_output": pooled}
    if output_hidden_states:
        out["hidden_states"] = tuple(hs[i] for i in range(n_out))
    return out


# ----------------------------- main -----------------------------------------------------
if __name__ == "__main__":
    key = jax.random.PRNGKey(0)
    pkey, ikey = jax.random.split(key)
    params = init_params(pkey)
    packed = pack_params(params)          # ONCE, outside the jitted per-call path

    # input_ids: [B, S, 4] with each class drawn from its own vocab
    id_keys = jax.random.split(ikey, 4)
    cols = [jax.random.randint(id_keys[i], (B, S), 0, N_TOKENS[i], dtype=jnp.int32)
            for i in range(4)]
    input_ids = jnp.stack(cols, axis=-1)
    attn_mask = jnp.ones((B, S), jnp.float32)

    fwd = jax.jit(functools.partial(midibert_forward, output_hidden_states=True))
    y = fwd(packed, input_ids, attn_mask)
    jax.block_until_ready(y["last_hidden_state"])
    jax.block_until_ready(y["pooler_output"])
    for hst in y["hidden_states"]:
        jax.block_until_ready(hst)

    assert y["last_hidden_state"].shape == (B, S, HIDDEN)
    assert y["pooler_output"].shape == (B, HIDDEN)
    assert len(y["hidden_states"]) == NUM_LAYERS + 1
    print("KERNEL_OK")
</pallas_src>

<mosaic_0001>
module attributes {stable_mosaic.version = 11 : i64} {
  func.func @_midibert_kernel(%arg0: memref<16x4xi32, #tpu.memory_space<vmem>>, %arg1: memref<1x16xf32, #tpu.memory_space<vmem>>, %arg2: memref<88x32xf32, #tpu.memory_space<vmem>>, %arg3: memref<51x32xf32, #tpu.memory_space<vmem>>, %arg4: memref<2x160x96xf32, #tpu.memory_space<vmem>>, %arg5: memref<2x8x96xf32, #tpu.memory_space<vmem>>, %arg6: memref<3x16x32xf32, #tpu.memory_space<vmem>>, %arg7: memref<2x32xf32, #tpu.memory_space<vmem>>) attributes {dimension_semantics = [], scalar_prefetch = 0 : i64, scratch_operands = 0 : i64, tpu.core_type = #tpu.core_type<tc>} {
    %c0 = arith.constant 0 : index
    %c0_0 = arith.constant 0 : index
    %0 = vector.load %arg0[%c0, %c0_0] : memref<16x4xi32, #tpu.memory_space<vmem>>, vector<16x4xi32>
    %1 = tpu.iota {dimensions = array<i32: 1>} : vector<16x88xi32>
    %cst = arith.constant 0.000000e+00 : f32
    %2 = vector.broadcast %cst : f32 to vector<16x88xf32>
    %3 = vector.extract_strided_slice %0 {offsets = [0, 0], sizes = [16, 1], strides = [1, 1]} : vector<16x4xi32> to vector<16x1xi32>
    %c0_i32 = arith.constant 0 : i32
    %4 = vector.broadcast %c0_i32 : i32 to vector<16x1xi32>
    %5 = arith.addi %3, %4 : vector<16x1xi32>
    %6 = vector.broadcast %5 : vector<16x1xi32> to vector<16x88xi32>
    %7 = arith.cmpi eq, %6, %1 : vector<16x88xi32>
    %8 = arith.extui %7 : vector<16x88xi1> to vector<16x88xi32>
    %9 = arith.sitofp %8 : vector<16x88xi32> to vector<16x88xf32>
    %10 = arith.addf %2, %9 : vector<16x88xf32>
    %11 = vector.extract_strided_slice %0 {offsets = [0, 1], sizes = [16, 1], strides = [1, 1]} : vector<16x4xi32> to vector<16x1xi32>
    %c16_i32 = arith.constant 16 : i32
    %12 = vector.broadcast %c16_i32 : i32 to vector<16x1xi32>
    %13 = arith.addi %11, %12 : vector<16x1xi32>
    %14 = vector.broadcast %13 : vector<16x1xi32> to vector<16x88xi32>
    %15 = arith.cmpi eq, %14, %1 : vector<16x88xi32>
    %16 = arith.extui %15 : vector<16x88xi1> to vector<16x88xi32>
    %17 = arith.sitofp %16 : vector<16x88xi32> to vector<16x88xf32>
    %18 = arith.addf %10, %17 : vector<16x88xf32>
    %19 = vector.extract_strided_slice %0 {offsets = [0, 2], sizes = [16, 1], strides = [1, 1]} : vector<16x4xi32> to vector<16x1xi32>
    %c36_i32 = arith.constant 36 : i32
    %20 = vector.broadcast %c36_i32 : i32 to vector<16x1xi32>
    %21 = arith.addi %19, %20 : vector<16x1xi32>
    %22 = vector.broadcast %21 : vector<16x1xi32> to vector<16x88xi32>
    %23 = arith.cmpi eq, %22, %1 : vector<16x88xi32>
    %24 = arith.extui %23 : vector<16x88xi1> to vector<16x88xi32>
    %25 = arith.sitofp %24 : vector<16x88xi32> to vector<16x88xf32>
    %26 = arith.addf %18, %25 : vector<16x88xf32>
    %27 = vector.extract_strided_slice %0 {offsets = [0, 3], sizes = [16, 1], strides = [1, 1]} : vector<16x4xi32> to vector<16x1xi32>
    %c60_i32 = arith.constant 60 : i32
    %28 = vector.broadcast %c60_i32 : i32 to vector<16x1xi32>
    %29 = arith.addi %27, %28 : vector<16x1xi32>
    %30 = vector.broadcast %29 : vector<16x1xi32> to vector<16x88xi32>
    %31 = arith.cmpi eq, %30, %1 : vector<16x88xi32>
    %32 = arith.extui %31 : vector<16x88xi1> to vector<16x88xi32>
    %33 = arith.sitofp %32 : vector<16x88xi32> to vector<16x88xf32>
    %34 = arith.addf %26, %33 : vector<16x88xf32>
    %c0_1 = arith.constant 0 : index
    %c0_2 = arith.constant 0 : index
    %35 = vector.load %arg3[%c0_1, %c0_2] : memref<51x32xf32, #tpu.memory_space<vmem>>, vector<8x32xf32>
    %36 = tpu.concatenate %35, %35 in 0 : vector<8x32xf32>, vector<8x32xf32> -> vector<16x32xf32>
    %c16 = arith.constant 16 : index
    %c0_3 = arith.constant 0 : index
    %37 = vector.load %arg3[%c16, %c0_3] : memref<51x32xf32, #tpu.memory_space<vmem>>, vector<32x32xf32>
    %c48 = arith.constant 48 : index
    %c0_4 = arith.constant 0 : index
    %38 = vector.load %arg3[%c48, %c0_4] : memref<51x32xf32, #tpu.memory_space<vmem>>, vector<3x32xf32>
    %39 = vector.extract_strided_slice %38 {offsets = [0, 0], sizes = [1, 32], strides = [1, 1]} : vector<3x32xf32> to vector<1x32xf32>
    %40 = vector.extract_strided_slice %38 {offsets = [1, 0], sizes = [1, 32], strides = [1, 1]} : vector<3x32xf32> to vector<1x32xf32>
    %41 = vector.extract_strided_slice %38 {offsets = [2, 0], sizes = [1, 32], strides = [1, 1]} : vector<3x32xf32> to vector<1x32xf32>
    %c0_5 = arith.constant 0 : index
    %c0_6 = arith.constant 0 : index
    %42 = vector.load %arg2[%c0_5, %c0_6] : memref<88x32xf32, #tpu.memory_space<vmem>>, vector<88x32xf32>
    %cst_7 = arith.constant dense<0.000000e+00> : vector<16x32xf32>
    %43 = tpu.matmul %34, %42, %cst_7 {dimension_numbers = #tpu.dot_dimension_numbers<[1], [0], [0], [1], [0, 0, 1, 1], [], []>} : vector<16x88xf32>, vector<88x32xf32>, vector<16x32xf32> -> vector<16x32xf32>
    %44 = arith.addf %36, %43 : vector<16x32xf32>
    %cst_8 = arith.constant dense<0.000000e+00> : vector<16xf32>
    %45 = vector.multi_reduction <add>, %44, %cst_8 [1] : vector<16x32xf32> to vector<16xf32>
    %46 = vector.shape_cast %45 : vector<16xf32> to vector<16x1xf32>
    %cst_9 = arith.constant 3.200000e+01 : f32
    %47 = vector.broadcast %cst_9 : f32 to vector<16x1xf32>
    %48 = arith.divf %46, %47 : vector<16x1xf32>
    %49 = vector.broadcast %48 : vector<16x1xf32> to vector<16x32xf32>
    %50 = arith.subf %44, %49 : vector<16x32xf32>
    %51 = arith.mulf %50, %50 : vector<16x32xf32>
    %cst_10 = arith.constant dense<0.000000e+00> : vector<16xf32>
    %52 = vector.multi_reduction <add>, %51, %cst_10 [1] : vector<16x32xf32> to vector<16xf32>
    %53 = vector.shape_cast %52 : vector<16xf32> to vector<16x1xf32>
    %cst_11 = arith.constant 3.200000e+01 : f32
    %54 = vector.broadcast %cst_11 : f32 to vector<16x1xf32>
    %55 = arith.divf %53, %54 : vector<16x1xf32>
    %56 = vector.broadcast %48 : vector<16x1xf32> to vector<16x32xf32>
    %57 = arith.subf %44, %56 : vector<16x32xf32>
    %cst_12 = arith.constant 9.99999996E-13 : f32
    %58 = vector.broadcast %cst_12 : f32 to vector<16x1xf32>
    %59 = arith.addf %55, %58 : vector<16x1xf32>
    %60 = math.rsqrt %59 : vector<16x1xf32>
    %61 = vector.broadcast %60 : vector<16x1xf32> to vector<16x32xf32>
    %62 = arith.mulf %57, %61 : vector<16x32xf32>
    %63 = vector.broadcast %40 : vector<1x32xf32> to vector<16x32xf32>
    %64 = arith.mulf %62, %63 : vector<16x32xf32>
    %65 = vector.broadcast %41 : vector<1x32xf32> to vector<16x32xf32>
    %66 = arith.addf %64, %65 : vector<16x32xf32>
    %c0_13 = arith.constant 0 : index
    %c0_14 = arith.constant 0 : index
    %c0_15 = arith.constant 0 : index
    %67 = vector.load %arg6[%c0_13, %c0_14, %c0_15] : memref<3x16x32xf32, #tpu.memory_space<vmem>>, vector<1x16x32xf32>
    %68 = vector.shape_cast %67 : vector<1x16x32xf32> to vector<16x32xf32>
    %69 = vector.shape_cast %66 : vector<16x32xf32> to vector<1x16x32xf32>
    tpu.vector_store %arg6[%c0_13, %c0_14, %c0_15], %69 {strides = array<i32>} : memref<3x16x32xf32, #tpu.memory_space<vmem>>, vector<1x16x32xf32>,
    %70 = tpu.iota {dimensions = array<i32: 0>} : vector<64x64xi32>
    %71 = tpu.iota {dimensions = array<i32: 1>} : vector<64x64xi32>
    %c3_i32 = arith.constant 3 : i32
    %72 = vector.broadcast %c3_i32 : i32 to vector<64x64xi32>
    %73 = arith.shrsi %70, %72 : vector<64x64xi32>
    %c3_i32_16 = arith.constant 3 : i32
    %74 = vector.broadcast %c3_i32_16 : i32 to vector<64x64xi32>
    %75 = arith.shrsi %71, %74 : vector<64x64xi32>
    %76 = arith.cmpi eq, %73, %75 : vector<64x64xi32>
    %c0_17 = arith.constant 0 : index
    %c0_18 = arith.constant 0 : index
    %77 = vector.load %arg1[%c0_17, %c0_18] : memref<1x16xf32, #tpu.memory_space<vmem>>, vector<1x16xf32>
    %78 = tpu.concatenate %77, %77, %77, %77 in 1 : vector<1x16xf32>, vector<1x16xf32>, vector<1x16xf32>, vector<1x16xf32> -> vector<1x64xf32>
    %cst_19 = arith.constant 0.000000e+00 : f32
    %79 = vector.broadcast %cst_19 : f32 to vector<1x64xf32>
    %80 = arith.cmpf ogt, %78, %79 : vector<1x64xf32>
    %81 = vector.broadcast %80 : vector<1x64xi1> to vector<64x64xi1>
    %82 = arith.andi %76, %81 : vector<64x64xi1>
    %cst_20 = arith.constant 0.000000e+00 : f32
    %cst_21 = arith.constant -3.40282347E+38 : f32
    %83 = vector.broadcast %cst_20 : f32 to vector<64x64xf32>
    %84 = vector.broadcast %cst_21 : f32 to vector<64x64xf32>
    %85 = arith.select %82, %83, %84 : vector<64x64xi1>, vector<64x64xf32>
    %86 = tpu.iota {dimensions = array<i32: 0>} : vector<64x32xi32>
    %87 = tpu.iota {dimensions = array<i32: 1>} : vector<64x32xi32>
    %c4_i32 = arith.constant 4 : i32
    %88 = vector.broadcast %c4_i32 : i32 to vector<64x32xi32>
    %89 = arith.shrsi %86, %88 : vector<64x32xi32>
    %c3_i32_22 = arith.constant 3 : i32
    %90 = vector.broadcast %c3_i32_22 : i32 to vector<64x32xi32>
    %91 = arith.shrsi %87, %90 : vector<64x32xi32>
    %92 = arith.cmpi eq, %89, %91 : vector<64x32xi32>
    %93 = arith.extui %92 : vector<64x32xi1> to vector<64x32xi32>
    %94 = arith.sitofp %93 : vector<64x32xi32> to vector<64x32xf32>
    %c0_23 = arith.constant 0 : index
    %c0_24 = arith.constant 0 : index
    %c0_25 = arith.constant 0 : index
    %95 = vector.load %arg4[%c0_23, %c0_24, %c0_25] : memref<2x160x96xf32, #tpu.memory_space<vmem>>, vector<1x32x96xf32>
    %96 = vector.shape_cast %95 : vector<1x32x96xf32> to vector<32x96xf32>
    %c0_26 = arith.constant 0 : index
    %c32 = arith.constant 32 : index
    %c0_27 = arith.constant 0 : index
    %97 = vector.load %arg4[%c0_26, %c32, %c0_27] : memref<2x160x96xf32, #tpu.memory_space<vmem>>, vector<1x32x32xf32>
    %98 = vector.shape_cast %97 : vector<1x32x32xf32> to vector<32x32xf32>
    %c0_28 = arith.constant 0 : index
    %c64 = arith.constant 64 : index
    %c0_29 = arith.constant 0 : index
    %99 = vector.load %arg4[%c0_28, %c64, %c0_29] : memref<2x160x96xf32, #tpu.memory_space<vmem>>, vector<1x32x64xf32>
    %100 = vector.shape_cast %99 : vector<1x32x64xf32> to vector<32x64xf32>
    %c0_30 = arith.constant 0 : index
    %c96 = arith.constant 96 : index
    %c0_31 = arith.constant 0 : index
    %101 = vector.load %arg4[%c0_30, %c96, %c0_31] : memref<2x160x96xf32, #tpu.memory_space<vmem>>, vector<1x64x32xf32>
    %102 = vector.shape_cast %101 : vector<1x64x32xf32> to vector<64x32xf32>
    %c0_32 = arith.constant 0 : index
    %c0_33 = arith.constant 0 : index
    %c0_34 = arith.constant 0 : index
    %103 = vector.load %arg5[%c0_32, %c0_33, %c0_34] : memref<2x8x96xf32, #tpu.memory_space<vmem>>, vector<1x8x96xf32>
    %104 = vector.shape_cast %103 : vector<1x8x96xf32> to vector<8x96xf32>
    %105 = vector.extract_strided_slice %104 {offsets = [0, 0], sizes = [1, 96], strides = [1, 1]} : vector<8x96xf32> to vector<1x96xf32>
    %106 = vector.extract_strided_slice %104 {offsets = [1, 0], sizes = [1, 32], strides = [1, 1]} : vector<8x96xf32> to vector<1x32xf32>
    %107 = vector.extract_strided_slice %104 {offsets = [2, 0], sizes = [1, 64], strides = [1, 1]} : vector<8x96xf32> to vector<1x64xf32>
    %108 = vector.extract_strided_slice %104 {offsets = [3, 0], sizes = [1, 32], strides = [1, 1]} : vector<8x96xf32> to vector<1x32xf32>
    %109 = vector.extract_strided_slice %104 {offsets = [4, 0], sizes = [1, 32], strides = [1, 1]} : vector<8x96xf32> to vector<1x32xf32>
    %110 = vector.extract_strided_slice %104 {offsets = [5, 0], sizes = [1, 32], strides = [1, 1]} : vector<8x96xf32> to vector<1x32xf32>
    %111 = vector.extract_strided_slice %104 {offsets = [6, 0], sizes = [1, 32], strides = [1, 1]} : vector<8x96xf32> to vector<1x32xf32>
    %112 = vector.extract_strided_slice %104 {offsets = [7, 0], sizes = [1, 32], strides = [1, 1]} : vector<8x96xf32> to vector<1x32xf32>
    %cst_35 = arith.constant dense<0.000000e+00> : vector<16x96xf32>
    %113 = tpu.matmul %66, %96, %cst_35 {dimension_numbers = #tpu.dot_dimension_numbers<[1], [0], [0], [1], [0, 0, 1, 1], [], []>} : vector<16x32xf32>, vector<32x96xf32>, vector<16x96xf32> -> vector<16x96xf32>
    %114 = vector.broadcast %105 : vector<1x96xf32> to vector<16x96xf32>
    %115 = arith.addf %113, %114 : vector<16x96xf32>
    %116 = vector.extract_strided_slice %115 {offsets = [0, 0], sizes = [16, 32], strides = [1, 1]} : vector<16x96xf32> to vector<16x32xf32>
    %117 = vector.extract_strided_slice %115 {offsets = [0, 32], sizes = [16, 32], strides = [1, 1]} : vector<16x96xf32> to vector<16x32xf32>
    %118 = vector.extract_strided_slice %115 {offsets = [0, 64], sizes = [16, 32], strides = [1, 1]} : vector<16x96xf32> to vector<16x32xf32>
    %119 = tpu.concatenate %116, %116, %116, %116 in 0 : vector<16x32xf32>, vector<16x32xf32>, vector<16x32xf32>, vector<16x32xf32> -> vector<64x32xf32>
    %120 = arith.mulf %119, %94 : vector<64x32xf32>
    %121 = tpu.concatenate %117, %117, %117, %117 in 0 : vector<16x32xf32>, vector<16x32xf32>, vector<16x32xf32>, vector<16x32xf32> -> vector<64x32xf32>
    %122 = tpu.concatenate %118, %118, %118, %118 in 0 : vector<16x32xf32>, vector<16x32xf32>, vector<16x32xf32>, vector<16x32xf32> -> vector<64x32xf32>
    %cst_36 = arith.constant dense<0.000000e+00> : vector<64x64xf32>
    %123 = tpu.matmul %120, %121, %cst_36 {dimension_numbers = #tpu.dot_dimension_numbers<[1], [1], [0], [0], [0, 0, 1, 0], [], []>} : vector<64x32xf32>, vector<64x32xf32>, vector<64x64xf32> -> vector<64x64xf32>
    %124 = arith.addf %123, %85 : vector<64x64xf32>
    %cst_37 = arith.constant dense<0xFF800000> : vector<64xf32>
    %125 = vector.multi_reduction <maximumf>, %124, %cst_37 [1] : vector<64x64xf32> to vector<64xf32>
    %126 = vector.shape_cast %125 : vector<64xf32> to vector<64x1xf32>
    %127 = vector.broadcast %126 : vector<64x1xf32> to vector<64x64xf32>
    %128 = arith.subf %124, %127 : vector<64x64xf32>
    %129 = math.exp %128 : vector<64x64xf32>
    %cst_38 = arith.constant dense<0.000000e+00> : vector<64xf32>
    %130 = vector.multi_reduction <add>, %129, %cst_38 [1] : vector<64x64xf32> to vector<64xf32>
    %131 = vector.shape_cast %130 : vector<64xf32> to vector<64x1xf32>
    %132 = vector.broadcast %131 : vector<64x1xf32> to vector<64x64xf32>
    %133 = arith.divf %129, %132 : vector<64x64xf32>
    %cst_39 = arith.constant dense<0.000000e+00> : vector<64x32xf32>
    %134 = tpu.matmul %133, %122, %cst_39 {dimension_numbers = #tpu.dot_dimension_numbers<[1], [0], [0], [1], [0, 0, 1, 1], [], []>} : vector<64x64xf32>, vector<64x32xf32>, vector<64x32xf32> -> vector<64x32xf32>
    %135 = arith.mulf %134, %94 : vector<64x32xf32>
    %136 = vector.extract_strided_slice %135 {offsets = [0, 0], sizes = [16, 32], strides = [1, 1]} : vector<64x32xf32> to vector<16x32xf32>
    %137 = vector.extract_strided_slice %135 {offsets = [16, 0], sizes = [16, 32], strides = [1, 1]} : vector<64x32xf32> to vector<16x32xf32>
    %138 = arith.addf %136, %137 : vector<16x32xf32>
    %139 = vector.extract_strided_slice %135 {offsets = [32, 0], sizes = [16, 32], strides = [1, 1]} : vector<64x32xf32> to vector<16x32xf32>
    %140 = arith.addf %138, %139 : vector<16x32xf32>
    %141 = vector.extract_strided_slice %135 {offsets = [48, 0], sizes = [16, 32], strides = [1, 1]} : vector<64x32xf32> to vector<16x32xf32>
    %142 = arith.addf %140, %141 : vector<16x32xf32>
    %cst_40 = arith.constant dense<0.000000e+00> : vector<16x32xf32>
    %143 = tpu.matmul %142, %98, %cst_40 {dimension_numbers = #tpu.dot_dimension_numbers<[1], [0], [0], [1], [0, 0, 1, 1], [], []>} : vector<16x32xf32>, vector<32x32xf32>, vector<16x32xf32> -> vector<16x32xf32>
    %144 = vector.broadcast %106 : vector<1x32xf32> to vector<16x32xf32>
    %145 = arith.addf %143, %144 : vector<16x32xf32>
    %146 = arith.addf %66, %145 : vector<16x32xf32>
    %cst_41 = arith.constant dense<0.000000e+00> : vector<16xf32>
    %147 = vector.multi_reduction <add>, %146, %cst_41 [1] : vector<16x32xf32> to vector<16xf32>
    %148 = vector.shape_cast %147 : vector<16xf32> to vector<16x1xf32>
    %cst_42 = arith.constant 3.200000e+01 : f32
    %149 = vector.broadcast %cst_42 : f32 to vector<16x1xf32>
    %150 = arith.divf %148, %149 : vector<16x1xf32>
    %151 = vector.broadcast %150 : vector<16x1xf32> to vector<16x32xf32>
    %152 = arith.subf %146, %151 : vector<16x32xf32>
    %153 = arith.mulf %152, %152 : vector<16x32xf32>
    %cst_43 = arith.constant dense<0.000000e+00> : vector<16xf32>
    %154 = vector.multi_reduction <add>, %153, %cst_43 [1] : vector<16x32xf32> to vector<16xf32>
    %155 = vector.shape_cast %154 : vector<16xf32> to vector<16x1xf32>
    %cst_44 = arith.constant 3.200000e+01 : f32
    %156 = vector.broadcast %cst_44 : f32 to vector<16x1xf32>
    %157 = arith.divf %155, %156 : vector<16x1xf32>
    %158 = vector.broadcast %150 : vector<16x1xf32> to vector<16x32xf32>
    %159 = arith.subf %146, %158 : vector<16x32xf32>
    %cst_45 = arith.constant 9.99999996E-13 : f32
    %160 = vector.broadcast %cst_45 : f32 to vector<16x1xf32>
    %161 = arith.addf %157, %160 : vector<16x1xf32>
    %162 = math.rsqrt %161 : vector<16x1xf32>
    %163 = vector.broadcast %162 : vector<16x1xf32> to vector<16x32xf32>
    %164 = arith.mulf %159, %163 : vector<16x32xf32>
    %165 = vector.broadcast %109 : vector<1x32xf32> to vector<16x32xf32>
    %166 = arith.mulf %164, %165 : vector<16x32xf32>
    %167 = vector.broadcast %110 : vector<1x32xf32> to vector<16x32xf32>
    %168 = arith.addf %166, %167 : vector<16x32xf32>
    %cst_46 = arith.constant dense<0.000000e+00> : vector<16x64xf32>
    %169 = tpu.matmul %168, %100, %cst_46 {dimension_numbers = #tpu.dot_dimension_numbers<[1], [0], [0], [1], [0, 0, 1, 1], [], []>} : vector<16x32xf32>, vector<32x64xf32>, vector<16x64xf32> -> vector<16x64xf32>
    %170 = vector.broadcast %107 : vector<1x64xf32> to vector<16x64xf32>
    %171 = arith.addf %169, %170 : vector<16x64xf32>
    %cst_47 = arith.constant 5.000000e-01 : f32
    %172 = vector.broadcast %cst_47 : f32 to vector<16x64xf32>
    %173 = arith.mulf %172, %171 : vector<16x64xf32>
    %cst_48 = arith.constant 4.471500e-02 : f32
    %174 = vector.broadcast %cst_48 : f32 to vector<16x64xf32>
    %175 = arith.mulf %174, %171 : vector<16x64xf32>
    %176 = arith.mulf %175, %171 : vector<16x64xf32>
    %177 = arith.mulf %176, %171 : vector<16x64xf32>
    %178 = arith.addf %171, %177 : vector<16x64xf32>
    %cst_49 = arith.constant 0.797884583 : f32
    %179 = vector.broadcast %cst_49 : f32 to vector<16x64xf32>
    %180 = arith.mulf %179, %178 : vector<16x64xf32>
    %181 = math.tanh %180 : vector<16x64xf32>
    %cst_50 = arith.constant 1.000000e+00 : f32
    %182 = vector.broadcast %cst_50 : f32 to vector<16x64xf32>
    %183 = arith.addf %182, %181 : vector<16x64xf32>
    %184 = arith.mulf %173, %183 : vector<16x64xf32>
    %cst_51 = arith.constant dense<0.000000e+00> : vector<16x32xf32>
    %185 = tpu.matmul %184, %102, %cst_51 {dimension_numbers = #tpu.dot_dimension_numbers<[1], [0], [0], [1], [0, 0, 1, 1], [], []>} : vector<16x64xf32>, vector<64x32xf32>, vector<16x32xf32> -> vector<16x32xf32>
    %186 = vector.broadcast %108 : vector<1x32xf32> to vector<16x32xf32>
    %187 = arith.addf %185, %186 : vector<16x32xf32>
    %188 = arith.addf %168, %187 : vector<16x32xf32>
    %cst_52 = arith.constant dense<0.000000e+00> : vector<16xf32>
    %189 = vector.multi_reduction <add>, %188, %cst_52 [1] : vector<16x32xf32> to vector<16xf32>
    %190 = vector.shape_cast %189 : vector<16xf32> to vector<16x1xf32>
    %cst_53 = arith.constant 3.200000e+01 : f32
    %191 = vector.broadcast %cst_53 : f32 to vector<16x1xf32>
    %192 = arith.divf %190, %191 : vector<16x1xf32>
    %193 = vector.broadcast %192 : vector<16x1xf32> to vector<16x32xf32>
    %194 = arith.subf %188, %193 : vector<16x32xf32>
    %195 = arith.mulf %194, %194 : vector<16x32xf32>
    %cst_54 = arith.constant dense<0.000000e+00> : vector<16xf32>
    %196 = vector.multi_reduction <add>, %195, %cst_54 [1] : vector<16x32xf32> to vector<16xf32>
    %197 = vector.shape_cast %196 : vector<16xf32> to vector<16x1xf32>
    %cst_55 = arith.constant 3.200000e+01 : f32
    %198 = vector.broadcast %cst_55 : f32 to vector<16x1xf32>
    %199 = arith.divf %197, %198 : vector<16x1xf32>
    %200 = vector.broadcast %192 : vector<16x1xf32> to vector<16x32xf32>
    %201 = arith.subf %188, %200 : vector<16x32xf32>
    %cst_56 = arith.constant 9.99999996E-13 : f32
    %202 = vector.broadcast %cst_56 : f32 to vector<16x1xf32>
    %203 = arith.addf %199, %202 : vector<16x1xf32>
    %204 = math.rsqrt %203 : vector<16x1xf32>
    %205 = vector.broadcast %204 : vector<16x1xf32> to vector<16x32xf32>
    %206 = arith.mulf %201, %205 : vector<16x32xf32>
    %207 = vector.broadcast %111 : vector<1x32xf32> to vector<16x32xf32>
    %208 = arith.mulf %206, %207 : vector<16x32xf32>
    %209 = vector.broadcast %112 : vector<1x32xf32> to vector<16x32xf32>
    %210 = arith.addf %208, %209 : vector<16x32xf32>
    %c1 = arith.constant 1 : index
    %c0_57 = arith.constant 0 : index
    %c0_58 = arith.constant 0 : index
    %211 = vector.load %arg6[%c1, %c0_57, %c0_58] : memref<3x16x32xf32, #tpu.memory_space<vmem>>, vector<1x16x32xf32>
    %212 = vector.shape_cast %211 : vector<1x16x32xf32> to vector<16x32xf32>
    %213 = vector.shape_cast %210 : vector<16x32xf32> to vector<1x16x32xf32>
    tpu.vector_store %arg6[%c1, %c0_57, %c0_58], %213 {strides = array<i32>} : memref<3x16x32xf32, #tpu.memory_space<vmem>>, vector<1x16x32xf32>,
    %c1_59 = arith.constant 1 : index
    %c0_60 = arith.constant 0 : index
    %c0_61 = arith.constant 0 : index
    %214 = vector.load %arg4[%c1_59, %c0_60, %c0_61] : memref<2x160x96xf32, #tpu.memory_space<vmem>>, vector<1x32x96xf32>
    %215 = vector.shape_cast %214 : vector<1x32x96xf32> to vector<32x96xf32>
    %c1_62 = arith.constant 1 : index
    %c32_63 = arith.constant 32 : index
    %c0_64 = arith.constant 0 : index
    %216 = vector.load %arg4[%c1_62, %c32_63, %c0_64] : memref<2x160x96xf32, #tpu.memory_space<vmem>>, vector<1x32x32xf32>
    %217 = vector.shape_cast %216 : vector<1x32x32xf32> to vector<32x32xf32>
    %c1_65 = arith.constant 1 : index
    %c64_66 = arith.constant 64 : index
    %c0_67 = arith.constant 0 : index
    %218 = vector.load %arg4[%c1_65, %c64_66, %c0_67] : memref<2x160x96xf32, #tpu.memory_space<vmem>>, vector<1x32x64xf32>
    %219 = vector.shape_cast %218 : vector<1x32x64xf32> to vector<32x64xf32>
    %c1_68 = arith.constant 1 : index
    %c96_69 = arith.constant 96 : index
    %c0_70 = arith.constant 0 : index
    %220 = vector.load %arg4[%c1_68, %c96_69, %c0_70] : memref<2x160x96xf32, #tpu.memory_space<vmem>>, vector<1x64x32xf32>
    %221 = vector.shape_cast %220 : vector<1x64x32xf32> to vector<64x32xf32>
    %c1_71 = arith.constant 1 : index
    %c0_72 = arith.constant 0 : index
    %c0_73 = arith.constant 0 : index
    %222 = vector.load %arg5[%c1_71, %c0_72, %c0_73] : memref<2x8x96xf32, #tpu.memory_space<vmem>>, vector<1x8x96xf32>
    %223 = vector.shape_cast %222 : vector<1x8x96xf32> to vector<8x96xf32>
    %224 = vector.extract_strided_slice %223 {offsets = [0, 0], sizes = [1, 96], strides = [1, 1]} : vector<8x96xf32> to vector<1x96xf32>
    %225 = vector.extract_strided_slice %223 {offsets = [1, 0], sizes = [1, 32], strides = [1, 1]} : vector<8x96xf32> to vector<1x32xf32>
    %226 = vector.extract_strided_slice %223 {offsets = [2, 0], sizes = [1, 64], strides = [1, 1]} : vector<8x96xf32> to vector<1x64xf32>
    %227 = vector.extract_strided_slice %223 {offsets = [3, 0], sizes = [1, 32], strides = [1, 1]} : vector<8x96xf32> to vector<1x32xf32>
    %228 = vector.extract_strided_slice %223 {offsets = [4, 0], sizes = [1, 32], strides = [1, 1]} : vector<8x96xf32> to vector<1x32xf32>
    %229 = vector.extract_strided_slice %223 {offsets = [5, 0], sizes = [1, 32], strides = [1, 1]} : vector<8x96xf32> to vector<1x32xf32>
    %230 = vector.extract_strided_slice %223 {offsets = [6, 0], sizes = [1, 32], strides = [1, 1]} : vector<8x96xf32> to vector<1x32xf32>
    %231 = vector.extract_strided_slice %223 {offsets = [7, 0], sizes = [1, 32], strides = [1, 1]} : vector<8x96xf32> to vector<1x32xf32>
    %cst_74 = arith.constant dense<0.000000e+00> : vector<16x96xf32>
    %232 = tpu.matmul %210, %215, %cst_74 {dimension_numbers = #tpu.dot_dimension_numbers<[1], [0], [0], [1], [0, 0, 1, 1], [], []>} : vector<16x32xf32>, vector<32x96xf32>, vector<16x96xf32> -> vector<16x96xf32>
    %233 = vector.broadcast %224 : vector<1x96xf32> to vector<16x96xf32>
    %234 = arith.addf %232, %233 : vector<16x96xf32>
    %235 = vector.extract_strided_slice %234 {offsets = [0, 0], sizes = [16, 32], strides = [1, 1]} : vector<16x96xf32> to vector<16x32xf32>
    %236 = vector.extract_strided_slice %234 {offsets = [0, 32], sizes = [16, 32], strides = [1, 1]} : vector<16x96xf32> to vector<16x32xf32>
    %237 = vector.extract_strided_slice %234 {offsets = [0, 64], sizes = [16, 32], strides = [1, 1]} : vector<16x96xf32> to vector<16x32xf32>
    %238 = tpu.concatenate %235, %235, %235, %235 in 0 : vector<16x32xf32>, vector<16x32xf32>, vector<16x32xf32>, vector<16x32xf32> -> vector<64x32xf32>
    %239 = arith.mulf %238, %94 : vector<64x32xf32>
    %240 = tpu.concatenate %236, %236, %236, %236 in 0 : vector<16x32xf32>, vector<16x32xf32>, vector<16x32xf32>, vector<16x32xf32> -> vector<64x32xf32>
    %241 = tpu.concatenate %237, %237, %237, %237 in 0 : vector<16x32xf32>, vector<16x32xf32>, vector<16x32xf32>, vector<16x32xf32> -> vector<64x32xf32>
    %cst_75 = arith.constant dense<0.000000e+00> : vector<64x64xf32>
    %242 = tpu.matmul %239, %240, %cst_75 {dimension_numbers = #tpu.dot_dimension_numbers<[1], [1], [0], [0], [0, 0, 1, 0], [], []>} : vector<64x32xf32>, vector<64x32xf32>, vector<64x64xf32> -> vector<64x64xf32>
    %243 = arith.addf %242, %85 : vector<64x64xf32>
    %cst_76 = arith.constant dense<0xFF800000> : vector<64xf32>
    %244 = vector.multi_reduction <maximumf>, %243, %cst_76 [1] : vector<64x64xf32> to vector<64xf32>
    %245 = vector.shape_cast %244 : vector<64xf32> to vector<64x1xf32>
    %246 = vector.broadcast %245 : vector<64x1xf32> to vector<64x64xf32>
    %247 = arith.subf %243, %246 : vector<64x64xf32>
    %248 = math.exp %247 : vector<64x64xf32>
    %cst_77 = arith.constant dense<0.000000e+00> : vector<64xf32>
    %249 = vector.multi_reduction <add>, %248, %cst_77 [1] : vector<64x64xf32> to vector<64xf32>
    %250 = vector.shape_cast %249 : vector<64xf32> to vector<64x1xf32>
    %251 = vector.broadcast %250 : vector<64x1xf32> to vector<64x64xf32>
    %252 = arith.divf %248, %251 : vector<64x64xf32>
    %cst_78 = arith.constant dense<0.000000e+00> : vector<64x32xf32>
    %253 = tpu.matmul %252, %241, %cst_78 {dimension_numbers = #tpu.dot_dimension_numbers<[1], [0], [0], [1], [0, 0, 1, 1], [], []>} : vector<64x64xf32>, vector<64x32xf32>, vector<64x32xf32> -> vector<64x32xf32>
    %254 = arith.mulf %253, %94 : vector<64x32xf32>
    %255 = vector.extract_strided_slice %254 {offsets = [0, 0], sizes = [16, 32], strides = [1, 1]} : vector<64x32xf32> to vector<16x32xf32>
    %256 = vector.extract_strided_slice %254 {offsets = [16, 0], sizes = [16, 32], strides = [1, 1]} : vector<64x32xf32> to vector<16x32xf32>
    %257 = arith.addf %255, %256 : vector<16x32xf32>
    %258 = vector.extract_strided_slice %254 {offsets = [32, 0], sizes = [16, 32], strides = [1, 1]} : vector<64x32xf32> to vector<16x32xf32>
    %259 = arith.addf %257, %258 : vector<16x32xf32>
    %260 = vector.extract_strided_slice %254 {offsets = [48, 0], sizes = [16, 32], strides = [1, 1]} : vector<64x32xf32> to vector<16x32xf32>
    %261 = arith.addf %259, %260 : vector<16x32xf32>
    %cst_79 = arith.constant dense<0.000000e+00> : vector<16x32xf32>
    %262 = tpu.matmul %261, %217, %cst_79 {dimension_numbers = #tpu.dot_dimension_numbers<[1], [0], [0], [1], [0, 0, 1, 1], [], []>} : vector<16x32xf32>, vector<32x32xf32>, vector<16x32xf32> -> vector<16x32xf32>
    %263 = vector.broadcast %225 : vector<1x32xf32> to vector<16x32xf32>
    %264 = arith.addf %262, %263 : vector<16x32xf32>
    %265 = arith.addf %210, %264 : vector<16x32xf32>
    %cst_80 = arith.constant dense<0.000000e+00> : vector<16xf32>
    %266 = vector.multi_reduction <add>, %265, %cst_80 [1] : vector<16x32xf32> to vector<16xf32>
    %267 = vector.shape_cast %266 : vector<16xf32> to vector<16x1xf32>
    %cst_81 = arith.constant 3.200000e+01 : f32
    %268 = vector.broadcast %cst_81 : f32 to vector<16x1xf32>
    %269 = arith.divf %267, %268 : vector<16x1xf32>
    %270 = vector.broadcast %269 : vector<16x1xf32> to vector<16x32xf32>
    %271 = arith.subf %265, %270 : vector<16x32xf32>
    %272 = arith.mulf %271, %271 : vector<16x32xf32>
    %cst_82 = arith.constant dense<0.000000e+00> : vector<16xf32>
    %273 = vector.multi_reduction <add>, %272, %cst_82 [1] : vector<16x32xf32> to vector<16xf32>
    %274 = vector.shape_cast %273 : vector<16xf32> to vector<16x1xf32>
    %cst_83 = arith.constant 3.200000e+01 : f32
    %275 = vector.broadcast %cst_83 : f32 to vector<16x1xf32>
    %276 = arith.divf %274, %275 : vector<16x1xf32>
    %277 = vector.broadcast %269 : vector<16x1xf32> to vector<16x32xf32>
    %278 = arith.subf %265, %277 : vector<16x32xf32>
    %cst_84 = arith.constant 9.99999996E-13 : f32
    %279 = vector.broadcast %cst_84 : f32 to vector<16x1xf32>
    %280 = arith.addf %276, %279 : vector<16x1xf32>
    %281 = math.rsqrt %280 : vector<16x1xf32>
    %282 = vector.broadcast %281 : vector<16x1xf32> to vector<16x32xf32>
    %283 = arith.mulf %278, %282 : vector<16x32xf32>
    %284 = vector.broadcast %228 : vector<1x32xf32> to vector<16x32xf32>
    %285 = arith.mulf %283, %284 : vector<16x32xf32>
    %286 = vector.broadcast %229 : vector<1x32xf32> to vector<16x32xf32>
    %287 = arith.addf %285, %286 : vector<16x32xf32>
    %cst_85 = arith.constant dense<0.000000e+00> : vector<16x64xf32>
    %288 = tpu.matmul %287, %219, %cst_85 {dimension_numbers = #tpu.dot_dimension_numbers<[1], [0], [0], [1], [0, 0, 1, 1], [], []>} : vector<16x32xf32>, vector<32x64xf32>, vector<16x64xf32> -> vector<16x64xf32>
    %289 = vector.broadcast %226 : vector<1x64xf32> to vector<16x64xf32>
    %290 = arith.addf %288, %289 : vector<16x64xf32>
    %cst_86 = arith.constant 5.000000e-01 : f32
    %291 = vector.broadcast %cst_86 : f32 to vector<16x64xf32>
    %292 = arith.mulf %291, %290 : vector<16x64xf32>
    %cst_87 = arith.constant 4.471500e-02 : f32
    %293 = vector.broadcast %cst_87 : f32 to vector<16x64xf32>
    %294 = arith.mulf %293, %290 : vector<16x64xf32>
    %295 = arith.mulf %294, %290 : vector<16x64xf32>
    %296 = arith.mulf %295, %290 : vector<16x64xf32>
    %297 = arith.addf %290, %296 : vector<16x64xf32>
    %cst_88 = arith.constant 0.797884583 : f32
    %298 = vector.broadcast %cst_88 : f32 to vector<16x64xf32>
    %299 = arith.mulf %298, %297 : vector<16x64xf32>
    %300 = math.tanh %299 : vector<16x64xf32>
    %cst_89 = arith.constant 1.000000e+00 : f32
    %301 = vector.broadcast %cst_89 : f32 to vector<16x64xf32>
    %302 = arith.addf %301, %300 : vector<16x64xf32>
    %303 = arith.mulf %292, %302 : vector<16x64xf32>
    %cst_90 = arith.constant dense<0.000000e+00> : vector<16x32xf32>
    %304 = tpu.matmul %303, %221, %cst_90 {dimension_numbers = #tpu.dot_dimension_numbers<[1], [0], [0], [1], [0, 0, 1, 1], [], []>} : vector<16x64xf32>, vector<64x32xf32>, vector<16x32xf32> -> vector<16x32xf32>
    %305 = vector.broadcast %227 : vector<1x32xf32> to vector<16x32xf32>
    %306 = arith.addf %304, %305 : vector<16x32xf32>
    %307 = arith.addf %287, %306 : vector<16x32xf32>
    %cst_91 = arith.constant dense<0.000000e+00> : vector<16xf32>
    %308 = vector.multi_reduction <add>, %307, %cst_91 [1] : vector<16x32xf32> to vector<16xf32>
    %309 = vector.shape_cast %308 : vector<16xf32> to vector<16x1xf32>
    %cst_92 = arith.constant 3.200000e+01 : f32
    %310 = vector.broadcast %cst_92 : f32 to vector<16x1xf32>
    %311 = arith.divf %309, %310 : vector<16x1xf32>
    %312 = vector.broadcast %311 : vector<16x1xf32> to vector<16x32xf32>
    %313 = arith.subf %307, %312 : vector<16x32xf32>
    %314 = arith.mulf %313, %313 : vector<16x32xf32>
    %cst_93 = arith.constant dense<0.000000e+00> : vector<16xf32>
    %315 = vector.multi_reduction <add>, %314, %cst_93 [1] : vector<16x32xf32> to vector<16xf32>
    %316 = vector.shape_cast %315 : vector<16xf32> to vector<16x1xf32>
    %cst_94 = arith.constant 3.200000e+01 : f32
    %317 = vector.broadcast %cst_94 : f32 to vector<16x1xf32>
    %318 = arith.divf %316, %317 : vector<16x1xf32>
    %319 = vector.broadcast %311 : vector<16x1xf32> to vector<16x32xf32>
    %320 = arith.subf %307, %319 : vector<16x32xf32>
    %cst_95 = arith.constant 9.99999996E-13 : f32
    %321 = vector.broadcast %cst_95 : f32 to vector<16x1xf32>
    %322 = arith.addf %318, %321 : vector<16x1xf32>
    %323 = math.rsqrt %322 : vector<16x1xf32>
    %324 = vector.broadcast %323 : vector<16x1xf32> to vector<16x32xf32>
    %325 = arith.mulf %320, %324 : vector<16x32xf32>
    %326 = vector.broadcast %230 : vector<1x32xf32> to vector<16x32xf32>
    %327 = arith.mulf %325, %326 : vector<16x32xf32>
    %328 = vector.broadcast %231 : vector<1x32xf32> to vector<16x32xf32>
    %329 = arith.addf %327, %328 : vector<16x32xf32>
    %c2 = arith.constant 2 : index
    %c0_96 = arith.constant 0 : index
    %c0_97 = arith.constant 0 : index
    %330 = vector.load %arg6[%c2, %c0_96, %c0_97] : memref<3x16x32xf32, #tpu.memory_space<vmem>>, vector<1x16x32xf32>
    %331 = vector.shape_cast %330 : vector<1x16x32xf32> to vector<16x32xf32>
    %332 = vector.shape_cast %329 : vector<16x32xf32> to vector<1x16x32xf32>
    tpu.vector_store %arg6[%c2, %c0_96, %c0_97], %332 {strides = array<i32>} : memref<3x16x32xf32, #tpu.memory_space<vmem>>, vector<1x16x32xf32>,
    %333 = vector.extract_strided_slice %329 {offsets = [0, 0], sizes = [1, 32], strides = [1, 1]} : vector<16x32xf32> to vector<1x32xf32>
    %334 = vector.extract_strided_slice %329 {offsets = [8, 0], sizes = [1, 32], strides = [1, 1]} : vector<16x32xf32> to vector<1x32xf32>
    %335 = tpu.concatenate %333, %334 in 0 : vector<1x32xf32>, vector<1x32xf32> -> vector<2x32xf32>
    %cst_98 = arith.constant dense<0.000000e+00> : vector<2x32xf32>
    %336 = tpu.matmul %335, %37, %cst_98 {dimension_numbers = #tpu.dot_dimension_numbers<[1], [0], [0], [1], [0, 0, 1, 1], [], []>} : vector<2x32xf32>, vector<32x32xf32>, vector<2x32xf32> -> vector<2x32xf32>
    %337 = vector.broadcast %39 : vector<1x32xf32> to vector<2x32xf32>
    %338 = arith.addf %336, %337 : vector<2x32xf32>
    %339 = math.tanh %338 : vector<2x32xf32>
    %c0_99 = arith.constant 0 : index
    %c0_100 = arith.constant 0 : index
    %340 = vector.load %arg7[%c0_99, %c0_100] : memref<2x32xf32, #tpu.memory_space<vmem>>, vector<2x32xf32>
    tpu.vector_store %arg7[%c0_99, %c0_100], %339 {strides = array<i32>} : memref<2x32xf32, #tpu.memory_space<vmem>>, vector<2x32xf32>,
    return
  }
}

</mosaic_0001>

<bundles_post_ra>
// kernel: midibert_forward.1
= control target key start
LH: loop header
LB: loop body
LE: loop exit
PB: predicated region body
PF: predicated region fallthrough
CT: control target
= control target key end

     0   :  { %13 = vsyncpa [#allocation3], 0  ;;  %s3662_s0 = inlined_call_operand.vmem [shape: s32[16,4], index: 0, kind: input, shape index: {}]   ;;  %s3663_s1 = inlined_call_operand.vmem [shape: f32[1,16], index: 1, kind: input, shape index: {}]   ;;  %s3664_s2 = inlined_call_operand.vmem [shape: f32[88,32], index: 2, kind: input, shape index: {}]   ;;  %s3665_s3 = inlined_call_operand.vmem [shape: f32[51,32], index: 3, kind: input, shape index: {}]   ;;  %s3666_s4 = inlined_call_operand.hbm [shape: f32[2,160,96], index: 4, kind: input, shape index: {}]   ;;  %s3667_s5 = inlined_call_operand.vmem [shape: f32[2,8,96], index: 5, kind: input, shape index: {}]   ;;  %s3668_s6 = inlined_call_operand.vmem [shape: f32[3,16,32], index: 6, kind: output, shape index: {0}]   ;;  %s3669_s7 = inlined_call_operand.hbm [shape: f32[2,32], index: 7, kind: output, shape index: {1}]  }
   0x1   :  { %14 = vsyncpa [#allocation4], 0  ;;  %s3001_s24 = smov [#allocation2]   ;;  %s2953_s28 = scalar_lea.hbm %s3666_s4, 5120 }
   0x2   :  { %s28_s25 = sshll.u32 %s3001_s24, 4  ;;  %p2954_p0 = scmp.ne.s32.totalorder %s3666_s4, %s2953_s28  ;;  %s29_s25 = int_to_ptr.vmem [resolvable:$true] %s28_s25 }
   0x3   :  { %p2957_p1 = scmp.lt.u32.totalorder %s2953_s28, %s3666_s4 }
   0x5   :  { %p2959_p2 = pnand %p2957_p1, %p2954_p0 }
   0x7   :  { %2962 = shalt.err (!%p2959_p2)
}
   0x8   :  { %s2963_s10 = scalar_lea.vmem %s29_s25, 5120  ;;  %p2968_p4 = scmp.lt.s32.totalorder %s29_s25, %s29_s25 }
   0x9   :  { %p2964_p3 = scmp.ne.s32.totalorder %s29_s25, %s2963_s10  ;;  %p2969_p5 = scmp.lt.s32.totalorder %s2963_s10, %s2963_s10 }
   0xb   :  { %p2970_p6 = por %p2969_p5, %p2968_p4 }
   0xd   :  { %p2971_p7 = pnand %p2970_p6, %p2964_p3 }
   0xf   :  { %2974 = shalt.err (!%p2971_p7)
}
  0x10   :  { %s3002_s11 = smov 128   ;;  %s3003_s12 = smov 8  }
  0x11   :  { %34 = dma.hbm_to_vmem [thread:$0]  %s3666_s4, 5120, %s29_s25, [#allocation3], %s3002_s11, %s3002_s11, %s3003_s12  }
  0x12   :  { %2997 = dma.done.wait [#allocation3], 5120  }
  0x13   :  { %2998 = vsyncadd [#allocation3], 4294962176  ;;  %v3004_v0 = vmov 0   ;;  %v41_v1 = vld [vmem:[%s3662_s0 + $0x8] sm:$0xff]  ;;  %v40_v2 = vld [vmem:[%s3662_s0] sm:$0xff]  ;;  %v3005_v11 = vmov 1   ;;  %v42_v28 = vlaneseq }
  0x14   :  { %2831 = vset.pattern.permute.xlu1 %v3004_v0  ;;  %2830 = vset.pattern.permute.xlu0 %v3004_v0  ;;  %v112_v3 = vld [vmem:[%s3664_s2] sm:$0xff]  ;;  %v113_v4 = vld [vmem:[%s3664_s2 + $0x8] sm:$0xff]  ;;  %v59_v5 = vadd.s32 16, %v41_v1  ;;  %v58_v6 = vadd.s32 16, %v40_v2  ;;  %v114_v8 = vld [vmem:[%s3664_s2 + $0x10] sm:$0xff]  ;;  %v74_v12 = vadd.s32 36, %v40_v2 }
  0x15   :  { %48 = vperm.xlu1 %2831, %v41_v1   ;;  %45 = vperm.xlu0 %2830, %v40_v2   ;;  %v2627_v7 = vpack.c.bf16 %v113_v4, %v112_v3  ;;  %v115_v9 = vld [vmem:[%s3664_s2 + $0x18] sm:$0xff]  ;;  %v75_v13 = vadd.s32 36, %v41_v1  ;;  %v116_v14 = vld [vmem:[%s3664_s2 + $0x20] sm:$0xff]  ;;  %v117_v15 = vld [vmem:[%s3664_s2 + $0x28] sm:$0xff]  ;;  %v3006_v17 = vmov 2   ;;  %v90_v20 = vadd.s32 60, %v40_v2 }
  0x16   :  { %v2631_v10 = vpack.c.bf16 %v115_v9, %v114_v8  ;;  %v2635_v16 = vpack.c.bf16 %v117_v15, %v116_v14  ;;  %v118_v18 = vld [vmem:[%s3664_s2 + $0x30] sm:$0xff]  ;;  %v119_v19 = vld [vmem:[%s3664_s2 + $0x38] sm:$0xff]  ;;  %v3007_v22 = vmov 3   ;;  %v120_v23 = vld [vmem:[%s3664_s2 + $0x40] sm:$0xff]  ;;  %v91_v25 = vadd.s32 60, %v41_v1  ;;  %s3009_s24 = smov 96  }
  0x17   :  { %2628 = vmatprep.subr.bf16.mxu0 %v2627_v7  ;;  %v2639_v21 = vpack.c.bf16 %v119_v19, %v118_v18  ;;  %v121_v24 = vld [vmem:[%s3664_s2 + $0x48] sm:$0xff]  ;;  %v122_v27 = vld [vmem:[%s3664_s2 + $0x50] sm:$0xff]  ;;  %v3112_v31 = vand.u32 127, %v42_v28  ;;  %v3008_v34 = vmov 0.0   ;;  %vm123_vm7 = vcmask 719872   ;;  %v106_v53 = vld [vmem:[%s3665_s3] sm:$0xff] }
  0x18   :  { %2630 = vmatpush3.bf16.msra.mxu0 %v2627_v7  ;;  %v2643_v26 = vpack.c.bf16 %v121_v24, %v120_v23  ;;  %vm207_vm9 = vcmask 261120   ;;  %v350_v7 = vld [vmem:[#allocation2] sm:$0xff]  ;;  %v351_v8 = vld [vmem:[#allocation2 + $0x8] sm:$0xff]  ;;  %v352_v9 = vld [vmem:[#allocation2 + $0x10] sm:$0xff]  ;;  %v3138_v18 = vshrl.u32 %v42_v28, 7  ;;  %s3010_s26 = smov 32  }
  0x19   :  { %2833 = vset.pattern.permute.xlu1 %v3005_v11  ;;  %2832 = vset.pattern.permute.xlu0 %v3005_v11  ;;  %v353_v11 = vld [vmem:[#allocation2 + $0x18] sm:$0xff]  ;;  %s3011_s27 = smov 16   ;;  %s3012_s28 = smov 48   ;;  %vm3209_vm11 = vmpackc.low %vm207_vm9, %vm207_vm9 }
  0x1a   :  { %64 = vperm.xlu1 %2833, %v59_v5   ;;  %61 = vperm.xlu0 %2832, %v58_v6   ;;  %s3017_s23 = smov [#allocation5]  }
  0x1b   :  { %2632 = vmatprep.subr.bf16.mxu0 %v2631_v10 }
  0x1c   :  { %2634 = vmatpush3.bf16.msra.mxu0 %v2631_v10  ;;  %v2647_v10 = vpack.c.bf16 %v351_v8, %v350_v7 }
  0x1d   :  { %2636 = vmatprep.subr.bf16.mxu0 %v2635_v16 }
  0x1e   :  { %2834 = vset.pattern.permute.xlu1 %v3006_v17  ;;  %2835 = vset.pattern.permute.xlu0 %v3006_v17 }
  0x1f   :  { %77 = vperm.xlu1 %2834, %v74_v12   ;;  %80 = vperm.xlu0 %2835, %v75_v13   ;;  %v2651_v12 = vpack.c.bf16 %v353_v11, %v352_v9 }
  0x20   :  { %2638 = vmatpush3.bf16.msra.mxu0 %v2635_v16  ;;  %2648 = vmatprep.subr.bf16.mxu1 %v2647_v10 }
  0x21   :  { %2640 = vmatprep.subr.bf16.mxu0 %v2639_v21  ;;  %2650 = vmatpush3.bf16.msra.mxu1 %v2647_v10 }
  0x22   :  { %2652 = vmatprep.subr.bf16.mxu1 %v2651_v12 }
  0x23   :  { %2836 = vset.pattern.permute.xlu1 %v3007_v22  ;;  %2857 = vset.pattern.permute.xlu0 %v3007_v22  ;;  %v3147_v22 = vsub.s32 2, %v3138_v18 }
  0x24   :  { %93 = vperm.xlu1 %2836, %v90_v20   ;;  %2642 = vmatpush3.bf16.msra.mxu0 %v2639_v21  ;;  %v3141_v20 = vsub.s32 1, %v3138_v18  ;;  %v111_v21 = vld [vmem:[%s3665_s3 + $0x30] sm:$0x7] }
  0x25   :  { %2644 = vmatprep.subr.bf16.mxu0 %v2643_v26  ;;  %2654 = vmatpush3.bf16.msra.mxu1 %v2651_v12 }
  0x26   :  { %v238_v23 = vrot.slane %v111_v21, %v3141_v20 }
  0x28   :  { %96 = vperm.xlu1 %2836, %v91_v25   ;;  %2646 = vmatpush3.bf16.msra.mxu0 %v2643_v26  ;;  %v244_v26 = vrot.slane %v111_v21, %v3147_v22 }
  0x29   :  { %2395 = vmatprep.subr.mxu0 %v122_v27 }
  0x2c   :  { %2396 = vmatpush3.msra.mxu0 %v122_v27 }
  0x94   :  { %v49_v29 = vpop.permute.xlu1 %48  ;;  %v46_v30 = vpop.permute.xlu0 %45 }
  0x95   :  { %vm50_vm0 = vcmp.eq.s32.totalorder %v46_v30, %v3112_v31  ;;  %vm51_vm4 = vcmp.eq.s32.totalorder %v49_v29, %v3112_v31 }
  0x96   :  { %v2149_v35 = vsel %vm50_vm0, 1.0, %v3008_v34  ;;  %v2150_v44 = vsel %vm51_vm4, 1.0, %v3008_v34  ;;  %vm293_vm4 = vcmask 392192  }
  0x99   :  { %v65_v32 = vpop.permute.xlu1 %64  ;;  %v62_v33 = vpop.permute.xlu0 %61 }
  0x9a   :  { %vm66_vm1 = vcmp.eq.s32.totalorder %v62_v33, %v3112_v31  ;;  %vm67_vm3 = vcmp.eq.s32.totalorder %v65_v32, %v3112_v31 }
  0x9b   :  { %v2151_v36 = vsel %vm66_vm1, 1.0, %v3008_v34  ;;  %v2152_v41 = vsel %vm67_vm3, 1.0, %v3008_v34  ;;  %vm290_vm3 = vcmask 130048  }
  0x9c   :  { %v72_v39 = vadd.f32 %v2151_v36, %v2149_v35  ;;  %v73_v47 = vadd.f32 %v2152_v41, %v2150_v44  ;;  %v3170_v35 = vsub.s32 0, %v3138_v18  ;;  %v3173_v36 = vshra.s32 %v3112_v31, 3 }
  0x9e   :  { %v78_v37 = vpop.permute.xlu1 %77  ;;  %v81_v38 = vpop.permute.xlu0 %80 }
  0x9f   :  { %vm82_vm2 = vcmp.eq.s32.totalorder %v78_v37, %v3112_v31  ;;  %vm83_vm5 = vcmp.eq.s32.totalorder %v81_v38, %v3112_v31  ;;  %v3178_v37 = vld [vmem:[%s3667_s5] sm:$0xff]  ;;  %v318_v38 = vshra.s32 %v3138_v18, 4 }
  0xa0   :  { %v2153_v40 = vsel %vm82_vm2, 1.0, %v3008_v34  ;;  %v2154_v45 = vsel %vm83_vm5, 1.0, %v3008_v34 }
  0xa1   :  { %v88_v43 = vadd.f32 %v2153_v40, %v72_v39  ;;  %v89_v50 = vadd.f32 %v2154_v45, %v73_v47  ;;  %v374_v39 = vrot.slane %v3178_v37, %v3170_v35  ;;  %vm326_vm10 = vcmp.eq.s32.totalorder %v318_v38, %v3173_v36 }
  0xa3   :  { %v94_v42 = vpop.permute.xlu1 %93 }
  0xa4   :  { %vm98_vm6 = vcmp.eq.s32.totalorder %v94_v42, %v3112_v31 }
  0xa5   :  { %v2155_v46 = vsel %vm98_vm6, 1.0, %v3008_v34 }
  0xa6   :  { %v104_v48 = vadd.f32 %v2155_v46, %v88_v43  ;;  %v3187_v43 = vsel %vm326_vm10, 1.0, %v3008_v34  ;;  %v3203_v46 = vld [vmem:[%s3663_s1] sm:$0x1]  ;;  %s3014_s1 = smov 64  }
  0xa7   :  { %v97_v49 = vpop.permute.xlu1 %96  ;;  %v280_v47 = vrot.slane %v3203_v46, %v3170_v35 }
  0xa8   :  { %vm99_vm8 = vcmp.eq.s32.totalorder %v97_v49, %v3112_v31  ;;  %2397 = vmatprep.mubr.msk.f32.mxu0 %vm123_vm7, %v104_v48 }
  0xa9   :  { %v2156_v51 = vsel %vm99_vm8, 1.0, %v3008_v34 }
  0xaa   :  { %v105_v52 = vadd.f32 %v2156_v51, %v89_v50 }
  0xac   :  { %2398 = vmatmul.mubr.msk.f32.vlgmr.msra.gmra.mrb[0].mxu0 %vm123_vm7, %v105_v52 }
 0x17f   :  { %v2399_v54 = vpop.f32.mrb[0].mxu0 }
 0x180   :  { %v206_v55 = vadd.f32 %v2399_v54, %v106_v53  ;;  %v196_v56 = vpop.f32.mrb[1].mxu0  ;;  %v3227_v54 = vadd.s32 16, %v3138_v18 }
 0x181   :  { %v205_v57 = vadd.f32 %v196_v56, %v106_v53  ;;  %v251_v53 = vadd.s32 8, %v3138_v18  ;;  %v3232_v56 = vadd.s32 24, %v3138_v18 }
 0x182   :  { %v211_v58 = vsel %vm207_vm9, %v206_v55, 0.0 }
 0x183   :  { %212 = vadd.xlane.f32.xlu1 %v211_v58  ;;  %v208_v59 = vsel %vm207_vm9, %v205_v57, 0.0  ;;  %v3236_v58 = vadd.s32 32, %v3138_v18 }
 0x184   :  { %209 = vadd.xlane.f32.xlu0 %v208_v59  ;;  %v321_v59 = vshra.s32 %v3232_v56, 4 }
 0x186   :  { %vm329_vm14 = vcmp.eq.s32.totalorder %v321_v59, %v3173_v36 }
 0x187   :  { %v3268_v7 = vsel %vm329_vm14, 1.0, %v3008_v34  ;;  %vm603_vm14 = vcmask 523264  }
 0x210   :  { %v213_v60 = vpop.xlane.xlu1 %212 }
 0x211   :  { %v216_v61 = vmul.f32 0.03125, %v213_v60  ;;  %v210_v62 = vpop.xlane.xlu0 %209  ;;  %v3241_v60 = vadd.s32 40, %v3138_v18 }
 0x212   :  { %v215_v63 = vmul.f32 0.03125, %v210_v62  ;;  %v3248_v62 = vadd.s32 48, %v3138_v18 }
 0x213   :  { %v218_v1 = vsub.f32 %v206_v55, %v216_v61  ;;  %v319_v55 = vshra.s32 %v251_v53, 4  ;;  %v322_v61 = vshra.s32 %v3236_v58, 4 }
 0x214   :  { %v217_v2 = vsub.f32 %v205_v57, %v215_v63  ;;  %v320_v57 = vshra.s32 %v3227_v54, 4 }
 0x215   :  { %v220_v5 = vmul.f32 %v218_v1, %v218_v1  ;;  %vm327_vm12 = vcmp.eq.s32.totalorder %v319_v55, %v3173_v36  ;;  %vm330_vm15 = vcmp.eq.s32.totalorder %v322_v61, %v3173_v36  ;;  %v264_v55 = vshra.s32 %v3248_v62, 3 }
 0x216   :  { %v219_v3 = vmul.f32 %v217_v2, %v217_v2  ;;  %vm328_vm13 = vcmp.eq.s32.totalorder %v320_v57, %v3173_v36  ;;  %v3251_v63 = vsel %vm327_vm12, 1.0, %v3008_v34  ;;  %v3272_v8 = vsel %vm330_vm15, 1.0, %v3008_v34 }
 0x217   :  { %v224_v6 = vsel %vm207_vm9, %v220_v5, 0.0 }
 0x218   :  { %v221_v4 = vsel %vm207_vm9, %v219_v3, 0.0  ;;  %v3259_v3 = vadd.s32 56, %v3138_v18 }
 0x219   :  { %222 = vadd.xlane.f32.xlu0 %v221_v4  ;;  %v324_v4 = vshra.s32 %v3248_v62, 4 }
 0x21a   :  { %v325_v9 = vshra.s32 %v3259_v3, 4  ;;  %v265_v61 = vshra.s32 %v3259_v3, 3 }
 0x21b   :  { %vm332_vm1 = vcmp.eq.s32.totalorder %v324_v4, %v3173_v36 }
 0x21c   :  { %vm333_vm2 = vcmp.eq.s32.totalorder %v325_v9, %v3173_v36 }
 0x21d   :  { %225 = vadd.xlane.f32.xlu0 %v224_v6 }
 0x233   :  { %281 = vrot.lane.b32.xlu0 %v280_v47, %s3011_s27 }
 0x2a6   :  { %v223_v13 = vpop.xlane.xlu0 %222 }
 0x2a7   :  { %v227_v14 = vmul.f32 0.03125, %v223_v13  ;;  %v3287_v13 = vsel %vm332_vm1, 1.0, %v3008_v34 }
 0x2a9   :  { %v229_v15 = vadd.f32 1e-12, %v227_v14 }
 0x2aa   :  { %v226_v16 = vpop.xlane.xlu0 %225 }
 0x2ab   :  { %2858 = vrsqrt.f32 %v229_v15  ;;  %v228_v17 = vmul.f32 0.03125, %v226_v16  ;;  %v3296_v16 = vsel %vm333_vm2, 1.0, %v3008_v34 }
 0x2ad   :  { %v230_v19 = vadd.f32 1e-12, %v228_v17 }
 0x2ae   :  { %v282_v21 = vpop.permute.xlu0 %281 }
 0x2af   :  { %2860 = vrsqrt.f32 %v230_v19 }
 0x2b5   :  { %v2859_v24 = vpop.eup %2858 }
 0x2b6   :  { %v233_v25 = vmul.f32 %v2859_v24, %v217_v2  ;;  %v323_v2 = vshra.s32 %v3241_v60, 4 }
 0x2b8   :  { %v239_v27 = vmul.f32 %v238_v23, %v233_v25  ;;  %vm331_vm0 = vcmp.eq.s32.totalorder %v323_v2, %v3173_v36 }
 0x2b9   :  { %v2861_v28 = vpop.eup %2860  ;;  %v3283_v12 = vsel %vm331_vm0, 1.0, %v3008_v34 }
 0x2ba   :  { %v3151_v29 = vadd.f32 %v244_v26, %v239_v27  ;;  %v234_v30 = vmul.f32 %v2861_v28, %v218_v1  ;;  %v3254_v1 = vsel %vm328_vm13, 1.0, %v3008_v34 }
 0x2bc   :  { %247 = vst.msk [vmem:[%s3668_s6] sm:$0xff] %vm207_vm9, %v3151_v29  ;;  %2408 = vmatprep.mubr.msk.f32.mxu1 %vm207_vm9, %v3151_v29  ;;  %v240_v32 = vmul.f32 %v238_v23, %v234_v30  ;;  %v291_v23 = vsel %vm290_vm3, %v3203_v46, %v282_v21  ;;  %v259_v30 = vshra.s32 %v251_v53, 3 }
 0x2be   :  { %v3160_v33 = vadd.f32 %v244_v26, %v240_v32  ;;  %v258_v32 = vshra.s32 %v3138_v18, 3  ;;  %vm268_vm7 = vcmp.eq.s32.totalorder %v259_v30, %v3173_v36 }
 0x2c0   :  { %248 = vst.msk [vmem:[%s3668_s6 + $0x8] sm:$0xff] %vm207_vm9, %v3160_v33  ;;  %2409 = vmatmul.mubr.msk.f32.vlgmr.msra.gmra.mrb[0].mxu1 %vm207_vm9, %v3160_v33  ;;  %vm267_vm8 = vcmp.eq.s32.totalorder %v258_v32, %v3173_v36 }
 0x393   :  { %v2410_v40 = vpop.f32.mrb[0].mxu1 }
 0x394   :  { %v3184_v41 = vadd.f32 %v2410_v40, %v374_v39  ;;  %v447_v42 = vpop.f32.mrb[1].mxu1 }
 0x395   :  { %v3189_v31 = vadd.f32 %v447_v42, %v374_v39  ;;  %v260_v39 = vshra.s32 %v3227_v54, 3  ;;  %v3013_v42 = vmov -3.4028235e+38  }
 0x396   :  { %v457_v5 = vmul.f32 %v3251_v63, %v3184_v41  ;;  %v459_v10 = vmul.f32 %v3268_v7, %v3184_v41  ;;  %v461_v14 = vmul.f32 %v3283_v12, %v3184_v41  ;;  %v463_v17 = vmul.f32 %v3296_v16, %v3184_v41 }
 0x397   :  { %v3193_v44 = vpack.i.bf16 %v3184_v41, %v3189_v31  ;;  %v456_v45 = vmul.f32 %v3187_v43, %v3189_v31  ;;  %v458_v6 = vmul.f32 %v3254_v1, %v3189_v31  ;;  %v460_v11 = vmul.f32 %v3272_v8, %v3189_v31 }
 0x398   :  { %v462_v15 = vmul.f32 %v3287_v13, %v3189_v31  ;;  %vm3321_vm13 = vcmp.eq.s32.totalorder %v260_v39, %v3173_v36  ;;  %v262_v41 = vshra.s32 %v3236_v58, 3 }
 0x399   :  { %2838 = vrot.lane.b32.xlu1 %v3193_v44, %s3009_s24  ;;  %2427 = vmatprep.mubr.msk.f32.mxu1 %vm207_vm9, %v456_v45 }
 0x39a   :  { %vm3344_vm1 = vcmp.eq.s32.totalorder %v262_v41, %v3173_v36 }
 0x39d   :  { %284 = vrot.lane.b32.xlu1 %v280_v47, %s3010_s26 }
 0x3a1   :  { %287 = vrot.lane.b32.xlu1 %v280_v47, %s3012_s28 }
 0x40b   :  { %v2839_v48 = vpop.permute.xlu1 %2838 }
 0x40c   :  { %v2841_v49 = vunpack.i.h.bf16 %v2839_v48  ;;  %v2840_v50 = vunpack.i.l.bf16 %v2839_v48 }
 0x40e   :  { %v2655_v52 = vpack.c.bf16 %v2841_v49, %v2840_v50  ;;  %v263_v50 = vshra.s32 %v3241_v60, 3 }
 0x40f   :  { %v285_v19 = vpop.permute.xlu1 %284 }
 0x410   :  { %2657 = vmatprep.subr.msk.bf16.mxu1 %vm3209_vm11, %v2655_v52  ;;  %v292_v25 = vsel %vm207_vm9, %v291_v23, %v285_v19  ;;  %vm3357_vm3 = vcmp.eq.s32.totalorder %v263_v50, %v3173_v36 }
 0x411   :  { %2660 = vmatpush3.bf16.xpose.msk.msra.mxu1 %vm3209_vm11, %v2655_v52 }
 0x412   :  { %2663 = vmatprep.subr.msk.bf16.mxu1 %vm3209_vm11, %v2655_v52 }
 0x413   :  { %v288_v24 = vpop.permute.xlu1 %287 }
 0x414   :  { %v294_v26 = vsel %vm293_vm4, %v292_v25, %v288_v24 }
 0x415   :  { %vm295_vm5 = vcmp.gt.f32.partialorder %v294_v26, 0.0 }
 0x416   :  { %v296_v27 = vsel %vm295_vm5, 1, %v3004_v0  ;;  %v261_v0 = vshra.s32 %v3232_v56, 3  ;;  %vm3370_vm5 = vcmp.eq.s32.totalorder %v264_v55, %v3173_v36 }
 0x417   :  { %v300_v28 = vrot.slane %v296_v27, %v3170_v35 }
 0x418   :  { %vm3332_vm15 = vcmp.eq.s32.totalorder %v261_v0, %v3173_v36 }
 0x419   :  { %2666 = vmatpush3.bf16.xpose.msk.msra.mxu1 %vm3209_vm11, %v2655_v52  ;;  %vm3308_vm6 = vcmp.eq.s32.totalorder %v300_v28, 1 }
 0x41a   :  { %2669 = vmatprep.subr.msk.bf16.mxu1 %vm3209_vm11, %v2655_v52  ;;  %vm303_vm10 = vmand %vm268_vm7, %vm3308_vm6 }
 0x41b   :  { %vm302_vm12 = vmand %vm267_vm8, %vm3308_vm6  ;;  %v3326_v31 = vsel %vm303_vm10, 0.0, %v3013_v42  ;;  %vm274_vm8 = vcmp.eq.s32.totalorder %v265_v61, %v3173_v36 }
 0x41c   :  { %v3329_v47 = vsel %vm302_vm12, 0.0, %v3013_v42  ;;  %vm304_vm0 = vmand %vm3321_vm13, %vm3308_vm6  ;;  %vm2128_vm13 = vcmask 254976  }
 0x41d   :  { %vm305_vm2 = vmand %vm3332_vm15, %vm3308_vm6  ;;  %v3354_v58 = vsel %vm304_vm0, 0.0, %v3013_v42 }
 0x41e   :  { %vm306_vm4 = vmand %vm3344_vm1, %vm3308_vm6  ;;  %v3367_v2 = vsel %vm305_vm2, 0.0, %v3013_v42 }
 0x41f   :  { %vm307_vm7 = vmand %vm3357_vm3, %vm3308_vm6  ;;  %v3380_v9 = vsel %vm306_vm4, 0.0, %v3013_v42 }
 0x420   :  { %vm308_vm10 = vmand %vm3370_vm5, %vm3308_vm6 }
 0x421   :  { %2672 = vmatpush3.bf16.xpose.msk.msra.mxu1 %vm3209_vm11, %v2655_v52  ;;  %vm309_vm12 = vmand %vm274_vm8, %vm3308_vm6  ;;  %v3395_v36 = vsel %vm308_vm10, 0.0, %v3013_v42  ;;  %vm2048_vm6 = vcmask 1040384  }
 0x422   :  { %2675 = vmatprep.subr.msk.bf16.mxu1 %vm3209_vm11, %v2655_v52  ;;  %v3398_v25 = vsel %vm309_vm12, 0.0, %v3013_v42 }
 0x429   :  { %2678 = vmatpush3.bf16.xpose.msk.msra.mxu1 %vm3209_vm11, %v2655_v52 }
 0x430   :  { %2428 = vmatmul.mubr.msk.f32.vlgmr.msra.gmra.mrb[2].mxu1 %vm207_vm9, %v457_v5 }
 0x431   :  { %2430 = vmatprep.mubr.msk.f32.mxu1 %vm207_vm9, %v458_v6 }
 0x434   :  { %2431 = vmatmul.mubr.msk.f32.gmra.mrb[4].mxu1 %vm207_vm9, %v459_v10 }
 0x435   :  { %2433 = vmatprep.mubr.msk.f32.mxu1 %vm207_vm9, %v460_v11 }
 0x438   :  { %2434 = vmatmul.mubr.msk.f32.gmra.mrb[6].mxu1 %vm207_vm9, %v461_v14  ;;  %v3388_v14 = vsel %vm307_vm7, 0.0, %v3013_v42 }
 0x439   :  { %2436 = vmatprep.mubr.msk.f32.mxu1 %vm207_vm9, %v462_v15 }
 0x43c   :  { %2437 = vmatmul.mubr.msk.f32.gmra.mrb[8].mxu1 %vm207_vm9, %v463_v17 }
 0x503   :  { %v2429_v45 = vpop.f32.mrb[2].mxu1 }
 0x504   :  { %v570_v46 = vadd.f32 %v2429_v45, %v3326_v31  ;;  %v564_v48 = vpop.f32.mrb[3].mxu1 }
 0x505   :  { %v565_v52 = vadd.f32 %v564_v48, %v3329_v47 }
 0x506   :  { %v607_v53 = vsel %vm603_vm14, %v570_v46, -inf }
 0x507   :  { %v2432_v56 = vpop.f32.mrb[4].mxu1  ;;  %608 = vmax.xlane.f32.xlu1 %v607_v53  ;;  %v604_v57 = vsel %vm603_vm14, %v565_v52, -inf }
 0x508   :  { %v574_v59 = vpop.f32.mrb[5].mxu1  ;;  %605 = vmax.xlane.f32.xlu0 %v604_v57  ;;  %v580_v5 = vadd.f32 %v2432_v56, %v3367_v2 }
 0x509   :  { %v575_v62 = vadd.f32 %v574_v59, %v3354_v58 }
 0x50a   :  { %v613_v21 = vsel %vm603_vm14, %v580_v5, -inf }
 0x50b   :  { %v2435_v3 = vpop.f32.mrb[6].mxu1  ;;  %v610_v6 = vsel %vm603_vm14, %v575_v62, -inf }
 0x50c   :  { %v584_v10 = vpop.f32.mrb[7].mxu1  ;;  %611 = vmax.xlane.f32.xlu0 %v610_v6  ;;  %v590_v15 = vadd.f32 %v2435_v3, %v3388_v14 }
 0x50d   :  { %v585_v11 = vadd.f32 %v584_v10, %v3380_v9 }
 0x50e   :  { %v619_v28 = vsel %vm603_vm14, %v590_v15, -inf }
 0x50f   :  { %v2438_v17 = vpop.f32.mrb[8].mxu1  ;;  %v616_v19 = vsel %vm603_vm14, %v585_v11, -inf }
 0x510   :  { %v594_v23 = vpop.f32.mrb[9].mxu1  ;;  %617 = vmax.xlane.f32.xlu1 %v616_v19  ;;  %614 = vmax.xlane.f32.xlu0 %v613_v21  ;;  %v600_v26 = vadd.f32 %v2438_v17, %v3398_v25 }
 0x511   :  { %v595_v24 = vadd.f32 %v594_v23, %v3395_v36 }
 0x512   :  { %v625_v30 = vsel %vm603_vm14, %v600_v26, -inf }
 0x513   :  { %v622_v27 = vsel %vm603_vm14, %v595_v24, -inf }
 0x514   :  { %623 = vmax.xlane.f32.xlu1 %v622_v27  ;;  %620 = vmax.xlane.f32.xlu0 %v619_v28 }
 0x518   :  { %626 = vmax.xlane.f32.xlu0 %v625_v30 }
 0x594   :  { %v609_v32 = vpop.xlane.xlu1 %608 }
 0x595   :  { %v629_v38 = vsub.f32 %v570_v46, %v609_v32  ;;  %v606_v39 = vpop.xlane.xlu0 %605 }
 0x596   :  { %v628_v0 = vsub.f32 %v565_v52, %v606_v39 }
 0x597   :  { %v638_v40 = vmul.f32 1.442695, %v629_v38 }
 0x598   :  { %v636_v41 = vmul.f32 1.442695, %v628_v0 }
 0x599   :  { %2862 = vpow2.f32 %v638_v40  ;;  %v612_v42 = vpop.xlane.xlu0 %611 }
 0x59a   :  { %2864 = vpow2.f32 %v636_v41  ;;  %v630_v45 = vsub.f32 %v575_v62, %v612_v42 }
 0x59c   :  { %v640_v48 = vmul.f32 1.442695, %v630_v45 }
 0x59d   :  { %v618_v49 = vpop.xlane.xlu1 %617  ;;  %v615_v50 = vpop.xlane.xlu0 %614 }
 0x59e   :  { %2866 = vpow2.f32 %v640_v48  ;;  %v632_v53 = vsub.f32 %v585_v11, %v618_v49  ;;  %v631_v54 = vsub.f32 %v580_v5, %v615_v50 }
 0x5a0   :  { %v644_v55 = vmul.f32 1.442695, %v632_v53  ;;  %v642_v56 = vmul.f32 1.442695, %v631_v54 }
 0x5a1   :  { %v624_v57 = vpop.xlane.xlu1 %623  ;;  %v621_v59 = vpop.xlane.xlu0 %620 }
 0x5a2   :  { %2868 = vpow2.f32 %v644_v55  ;;  %v634_v46 = vsub.f32 %v595_v24, %v624_v57  ;;  %v633_v60 = vsub.f32 %v590_v15, %v621_v59 }
 0x5a3   :  { %v3404_v52 = vpop.eup %2862  ;;  %2870 = vpow2.f32 %v642_v56 }
 0x5a4   :  { %v2865_v61 = vpop.eup %2864  ;;  %v646_v4 = vmul.f32 1.442695, %v633_v60  ;;  %v655_v62 = vsel %vm603_vm14, %v3404_v52, 0.0  ;;  %v648_v3 = vmul.f32 1.442695, %v634_v46 }
 0x5a5   :  { %656 = vadd.xlane.f32.xlu0 %v655_v62  ;;  %v627_v6 = vpop.xlane.xlu0 %626  ;;  %v652_v5 = vsel %vm603_vm14, %v2865_v61, 0.0 }
 0x5a6   :  { %v635_v10 = vsub.f32 %v600_v26, %v627_v6  ;;  %653 = vadd.xlane.f32.xlu1 %v652_v5  ;;  %2872 = vpow2.f32 %v646_v4 }
 0x5a7   :  { %2874 = vpow2.f32 %v648_v3 }
 0x5a8   :  { %v2867_v11 = vpop.eup %2866  ;;  %v650_v17 = vmul.f32 1.442695, %v635_v10 }
 0x5a9   :  { %v658_v15 = vsel %vm603_vm14, %v2867_v11, 0.0 }
 0x5aa   :  { %659 = vadd.xlane.f32.xlu1 %v658_v15  ;;  %2876 = vpow2.f32 %v650_v17 }
 0x5ac   :  { %v2869_v19 = vpop.eup %2868 }
 0x5ad   :  { %v2871_v21 = vpop.eup %2870  ;;  %v664_v23 = vsel %vm603_vm14, %v2869_v19, 0.0 }
 0x5ae   :  { %665 = vadd.xlane.f32.xlu1 %v664_v23  ;;  %v661_v24 = vsel %vm603_vm14, %v2871_v21, 0.0  ;;  %v355_v23 = vld [vmem:[#allocation2 + $0x28] sm:$0xff] }
 0x5af   :  { %662 = vadd.xlane.f32.xlu0 %v661_v24  ;;  %v357_v24 = vld [vmem:[#allocation2 + $0x38] sm:$0xff] }
 0x5b0   :  { %v2873_v27 = vpop.eup %2872 }
 0x5b1   :  { %v667_v26 = vsel %vm603_vm14, %v2873_v27, 0.0  ;;  %v2875_v28 = vpop.eup %2874 }
 0x5b2   :  { %v670_v30 = vsel %vm603_vm14, %v2875_v28, 0.0 }
 0x5b3   :  { %668 = vadd.xlane.f32.xlu0 %v667_v26 }
 0x5b4   :  { %v2877_v32 = vpop.eup %2876 }
 0x5b5   :  { %v673_v38 = vsel %vm603_vm14, %v2877_v32, 0.0 }
 0x5b7   :  { %671 = vadd.xlane.f32.xlu0 %v670_v30 }
 0x5bb   :  { %674 = vadd.xlane.f32.xlu0 %v673_v38 }
 0x5bf   :  { %2843 = vrot.lane.b32.xlu1 %v3193_v44, %s3014_s1 }
 0x632   :  { %v657_v40 = vpop.xlane.xlu0 %656 }
 0x633   :  { %v654_v39 = vpop.xlane.xlu1 %653 }
 0x634   :  { %2878 = vrcp.f32 %v654_v39 }
 0x635   :  { %2880 = vrcp.f32 %v657_v40 }
 0x637   :  { %v660_v0 = vpop.xlane.xlu1 %659 }
 0x638   :  { %2882 = vrcp.f32 %v660_v0 }
 0x63b   :  { %v666_v41 = vpop.xlane.xlu1 %665 }
 0x63c   :  { %v663_v42 = vpop.xlane.xlu0 %662 }
 0x63d   :  { %2884 = vrcp.f32 %v663_v42 }
 0x63e   :  { %v2879_v45 = vpop.eup %2878  ;;  %2886 = vrcp.f32 %v666_v41 }
 0x63f   :  { %v2844_v48 = vpop.permute.xlu1 %2843  ;;  %v677_v49 = vmul.f32 %v2879_v45, %v2865_v61  ;;  %v2881_v57 = vpop.eup %2880 }
 0x640   :  { %v2846_v50 = vunpack.i.h.bf16 %v2844_v48  ;;  %v2845_v53 = vunpack.i.l.bf16 %v2844_v48  ;;  %v669_v55 = vpop.xlane.xlu0 %668  ;;  %v679_v46 = vmul.f32 %v2881_v57, %v3404_v52 }
 0x641   :  { %2455 = vmatprep.mubr.msk.f32.mxu0 %vm603_vm14, %v677_v49  ;;  %2888 = vrcp.f32 %v669_v55 }
 0x642   :  { %v2679_v54 = vpack.c.bf16 %v2846_v50, %v2845_v53  ;;  %v2883_v59 = vpop.eup %2882 }
 0x643   :  { %v681_v61 = vmul.f32 %v2883_v59, %v2867_v11  ;;  %v354_v11 = vld [vmem:[#allocation2 + $0x20] sm:$0xff] }
 0x644   :  { %2680 = vmatprep.subr.bf16.mxu0 %v2679_v54  ;;  %v672_v44 = vpop.xlane.xlu0 %671 }
 0x645   :  { %2682 = vmatpush3.bf16.msra.mxu0 %v2679_v54  ;;  %2890 = vrcp.f32 %v672_v44 }
 0x646   :  { %2684 = vmatprep.subr.bf16.mxu0 %v2679_v54 }
 0x647   :  { %v2885_v60 = vpop.eup %2884 }
 0x648   :  { %v675_v56 = vpop.xlane.xlu0 %674  ;;  %v2887_v4 = vpop.eup %2886  ;;  %v683_v62 = vmul.f32 %v2885_v60, %v2871_v21  ;;  %v2695_v21 = vpack.c.bf16 %v355_v23, %v354_v11  ;;  %v844_v60 = vrot.slane %v3178_v37, %v3141_v20 }
 0x649   :  { %2686 = vmatpush3.bf16.msra.mxu0 %v2679_v54  ;;  %2892 = vrcp.f32 %v675_v56  ;;  %v685_v6 = vmul.f32 %v2887_v4, %v2869_v19  ;;  %v356_v19 = vld [vmem:[#allocation2 + $0x30] sm:$0xff] }
 0x64a   :  { %2688 = vmatprep.subr.bf16.mxu0 %v2679_v54  ;;  %v2699_v26 = vpack.c.bf16 %v357_v24, %v356_v19 }
 0x64b   :  { %v2889_v3 = vpop.eup %2888 }
 0x64c   :  { %v687_v10 = vmul.f32 %v2889_v3, %v2873_v27 }
 0x64d   :  { %2690 = vmatpush3.bf16.msra.mxu0 %v2679_v54 }
 0x64e   :  { %2692 = vmatprep.subr.bf16.mxu0 %v2679_v54 }
 0x64f   :  { %v2891_v5 = vpop.eup %2890 }
 0x650   :  { %v689_v15 = vmul.f32 %v2891_v5, %v2875_v28 }
 0x651   :  { %2694 = vmatpush3.bf16.msra.mxu0 %v2679_v54 }
 0x652   :  { %2696 = vmatprep.subr.bf16.mxu0 %v2695_v21 }
 0x653   :  { %v2893_v17 = vpop.eup %2892 }
 0x654   :  { %2456 = vmatmul.mubr.msk.f32.vlgmr.msra.gmra.mrb[2].mxu0 %vm603_vm14, %v679_v46  ;;  %v691_v52 = vmul.f32 %v2893_v17, %v2877_v32 }
 0x655   :  { %2458 = vmatprep.mubr.msk.f32.mxu0 %vm603_vm14, %v681_v61  ;;  %2698 = vmatpush3.bf16.msra.mxu0 %v2695_v21 }
 0x656   :  { %2700 = vmatprep.subr.bf16.mxu0 %v2699_v26 }
 0x658   :  { %2459 = vmatmul.mubr.msk.f32.gmra.mrb[4].mxu0 %vm603_vm14, %v683_v62 }
 0x659   :  { %2461 = vmatprep.mubr.msk.f32.mxu0 %vm603_vm14, %v685_v6  ;;  %2702 = vmatpush3.bf16.msra.mxu0 %v2699_v26 }
 0x65c   :  { %2462 = vmatmul.mubr.msk.f32.gmra.mrb[6].mxu0 %vm603_vm14, %v687_v10 }
 0x65d   :  { %2464 = vmatprep.mubr.msk.f32.mxu0 %vm603_vm14, %v689_v15 }
 0x660   :  { %2465 = vmatmul.mubr.msk.f32.gmra.mrb[8].mxu0 %vm603_vm14, %v691_v52 }
 0x727   :  { %v2457_v27 = vpop.f32.mrb[2].mxu0 }
 0x728   :  { %v788_v30 = vpop.f32.mrb[3].mxu0  ;;  %v828_v38 = vmul.f32 %v2457_v27, %v3251_v63 }
 0x729   :  { %v827_v0 = vmul.f32 %v3187_v43, %v788_v30  ;;  %v358_v30 = vld [vmem:[#allocation2 + $0x40] sm:$0xff] }
 0x72b   :  { %v2460_v28 = vpop.f32.mrb[4].mxu0 }
 0x72c   :  { %v830_v39 = vmul.f32 %v2460_v28, %v3268_v7  ;;  %v798_v32 = vpop.f32.mrb[5].mxu0 }
 0x72d   :  { %v829_v40 = vmul.f32 %v3254_v1, %v798_v32 }
 0x72e   :  { %v836_v41 = vadd.f32 %v830_v39, %v828_v38  ;;  %v360_v38 = vld [vmem:[#allocation2 + $0x50] sm:$0xff]  ;;  %v361_v39 = vld [vmem:[#allocation2 + $0x58] sm:$0xff] }
 0x72f   :  { %v835_v42 = vadd.f32 %v829_v40, %v827_v0  ;;  %v2463_v45 = vpop.f32.mrb[6].mxu0  ;;  %v2707_v32 = vpack.c.bf16 %v361_v39, %v360_v38 }
 0x730   :  { %v832_v48 = vmul.f32 %v2463_v45, %v3283_v12  ;;  %v808_v49 = vpop.f32.mrb[7].mxu0 }
 0x731   :  { %v831_v50 = vmul.f32 %v3272_v8, %v808_v49  ;;  %v956_v49 = vsub.s32 4, %v3138_v18 }
 0x732   :  { %v838_v53 = vadd.f32 %v836_v41, %v832_v48 }
 0x733   :  { %v837_v54 = vadd.f32 %v835_v42, %v831_v50  ;;  %v2466_v55 = vpop.f32.mrb[8].mxu0  ;;  %v962_v50 = vsub.s32 5, %v3138_v18 }
 0x734   :  { %v834_v44 = vmul.f32 %v2466_v55, %v3296_v16  ;;  %v818_v56 = vpop.f32.mrb[9].mxu0 }
 0x735   :  { %v833_v57 = vmul.f32 %v3287_v13, %v818_v56 }
 0x736   :  { %v840_v59 = vadd.f32 %v838_v53, %v834_v44  ;;  %v957_v53 = vrot.slane %v3178_v37, %v956_v49  ;;  %v963_v44 = vrot.slane %v3178_v37, %v962_v50 }
 0x737   :  { %v839_v46 = vadd.f32 %v837_v54, %v833_v57 }
 0x739   :  { %2475 = vmatprep.mubr.msk.f32.mxu0 %vm207_vm9, %v839_v46 }
 0x73a   :  { %2476 = vmatmul.mubr.msk.f32.vlgmr.msra.gmra.mrb[10].mxu0 %vm207_vm9, %v840_v59 }
 0x80d   :  { %v2477_v61 = vpop.f32.mrb[10].mxu0 }
 0x80e   :  { %v917_v4 = vpop.f32.mrb[11].mxu0  ;;  %v923_v62 = vadd.f32 %v2477_v61, %v844_v60 }
 0x80f   :  { %v918_v3 = vadd.f32 %v917_v4, %v844_v60  ;;  %v362_v4 = vld [vmem:[#allocation2 + $0x60] sm:$0xff] }
 0x810   :  { %v927_v10 = vadd.f32 %v923_v62, %v3160_v33  ;;  %v359_v33 = vld [vmem:[#allocation2 + $0x48] sm:$0xff] }
 0x811   :  { %v926_v6 = vadd.f32 %v918_v3, %v3151_v29  ;;  %v2703_v28 = vpack.c.bf16 %v359_v33, %v358_v30  ;;  %v363_v62 = vld [vmem:[#allocation2 + $0x68] sm:$0xff] }
 0x812   :  { %v931_v17 = vsel %vm207_vm9, %v927_v10, 0.0  ;;  %v2711_v3 = vpack.c.bf16 %v363_v62, %v362_v4 }
 0x813   :  { %v928_v5 = vsel %vm207_vm9, %v926_v6, 0.0  ;;  %2704 = vmatprep.subr.bf16.mxu1 %v2703_v28 }
 0x814   :  { %929 = vadd.xlane.f32.xlu0 %v928_v5  ;;  %2706 = vmatpush3.bf16.msra.mxu1 %v2703_v28  ;;  %v365_v5 = vld [vmem:[#allocation2 + $0x78] sm:$0xff] }
 0x815   :  { %2708 = vmatprep.subr.bf16.mxu1 %v2707_v32  ;;  %2712 = vmatprep.subr.bf16.mxu0 %v2711_v3 }
 0x816   :  { %2714 = vmatpush3.bf16.msra.mxu0 %v2711_v3 }
 0x818   :  { %932 = vadd.xlane.f32.xlu0 %v931_v17  ;;  %2710 = vmatpush3.bf16.msra.mxu1 %v2707_v32  ;;  %v366_v17 = vld [vmem:[#allocation2 + $0x80] sm:$0xff] }
 0x8a1   :  { %v930_v15 = vpop.xlane.xlu0 %929 }
 0x8a2   :  { %v934_v52 = vmul.f32 0.03125, %v930_v15  ;;  %v367_v15 = vld [vmem:[#allocation2 + $0x88] sm:$0xff] }
 0x8a4   :  { %v936_v11 = vsub.f32 %v926_v6, %v934_v52  ;;  %v364_v6 = vld [vmem:[#allocation2 + $0x70] sm:$0xff]  ;;  %v2719_v52 = vpack.c.bf16 %v367_v15, %v366_v17 }
 0x8a5   :  { %v933_v23 = vpop.xlane.xlu0 %932 }
 0x8a6   :  { %v935_v21 = vmul.f32 0.03125, %v933_v23  ;;  %v938_v19 = vmul.f32 %v936_v11, %v936_v11  ;;  %v369_v23 = vld [vmem:[#allocation2 + $0x98] sm:$0xff] }
 0x8a8   :  { %v937_v24 = vsub.f32 %v927_v10, %v935_v21  ;;  %v940_v26 = vsel %vm207_vm9, %v938_v19, 0.0  ;;  %v2715_v10 = vpack.c.bf16 %v365_v5, %v364_v6  ;;  %v969_v19 = vrot.slane %v3178_v37, %v3147_v22 }
 0x8a9   :  { %941 = vadd.xlane.f32.xlu1 %v940_v26 }
 0x8aa   :  { %v939_v27 = vmul.f32 %v937_v24, %v937_v24  ;;  %2716 = vmatprep.subr.bf16.mxu0 %v2715_v10 }
 0x8ab   :  { %2718 = vmatpush3.bf16.msra.mxu0 %v2715_v10 }
 0x8ac   :  { %v943_v29 = vsel %vm207_vm9, %v939_v27, 0.0  ;;  %2720 = vmatprep.subr.bf16.mxu0 %v2719_v52 }
 0x8ad   :  { %944 = vadd.xlane.f32.xlu0 %v943_v29 }
 0x8af   :  { %2722 = vmatpush3.bf16.msra.mxu0 %v2719_v52 }
 0x936   :  { %v942_v0 = vpop.xlane.xlu1 %941 }
 0x937   :  { %v946_v40 = vmul.f32 0.03125, %v942_v0 }
 0x939   :  { %v948_v41 = vadd.f32 1e-12, %v946_v40 }
 0x93a   :  { %v945_v42 = vpop.xlane.xlu0 %944 }
 0x93b   :  { %2894 = vrsqrt.f32 %v948_v41  ;;  %v947_v45 = vmul.f32 0.03125, %v945_v42 }
 0x93d   :  { %v949_v48 = vadd.f32 1e-12, %v947_v45 }
 0x93f   :  { %2896 = vrsqrt.f32 %v949_v48 }
 0x945   :  { %v2895_v54 = vpop.eup %2894 }
 0x946   :  { %v952_v55 = vmul.f32 %v2895_v54, %v936_v11  ;;  %v368_v11 = vld [vmem:[#allocation2 + $0x90] sm:$0xff] }
 0x947   :  { %v2723_v21 = vpack.c.bf16 %v369_v23, %v368_v11 }
 0x948   :  { %v958_v56 = vmul.f32 %v957_v53, %v952_v55 }
 0x949   :  { %v2897_v57 = vpop.eup %2896  ;;  %2724 = vmatprep.subr.bf16.mxu0 %v2723_v21 }
 0x94a   :  { %v953_v59 = vmul.f32 %v2897_v57, %v937_v24  ;;  %v964_v46 = vadd.f32 %v963_v44, %v958_v56  ;;  %2726 = vmatpush3.bf16.msra.mxu0 %v2723_v21 }
 0x94c   :  { %v959_v60 = vmul.f32 %v957_v53, %v953_v59  ;;  %2486 = vmatprep.mubr.msk.f32.mxu1 %vm207_vm9, %v964_v46  ;;  %v1071_v59 = vsub.s32 3, %v3138_v18 }
 0x94e   :  { %v965_v61 = vadd.f32 %v963_v44, %v959_v60  ;;  %v1072_v60 = vrot.slane %v3178_v37, %v1071_v59 }
 0x950   :  { %2487 = vmatmul.mubr.msk.f32.vlgmr.msra.gmra.mrb[10].mxu1 %vm207_vm9, %v965_v61 }
 0xa23   :  { %v2488_v24 = vpop.f32.mrb[10].mxu1 }
 0xa24   :  { %v1048_v26 = vadd.f32 %v2488_v24, %v969_v19  ;;  %v1042_v27 = vpop.f32.mrb[11].mxu1 }
 0xa25   :  { %v1043_v29 = vadd.f32 %v1042_v27, %v969_v19 }
 0xa26   :  { %v1054_v30 = vmul.f32 0.044715, %v1048_v26  ;;  %v1052_v44 = vmul.f32 0.5, %v1048_v26 }
 0xa27   :  { %v1053_v33 = vmul.f32 0.044715, %v1043_v29  ;;  %v1051_v54 = vmul.f32 0.5, %v1043_v29 }
 0xa28   :  { %v1056_v28 = vmul.f32 %v1054_v30, %v1048_v26  ;;  %v1198_v30 = vld [vmem:[#allocation2 + $0xa0] sm:$0xff] }
 0xa29   :  { %v1055_v38 = vmul.f32 %v1053_v33, %v1043_v29 }
 0xa2a   :  { %v1058_v39 = vmul.f32 %v1056_v28, %v1048_v26  ;;  %v1200_v28 = vld [vmem:[#allocation2 + $0xb0] sm:$0xff] }
 0xa2b   :  { %v1057_v32 = vmul.f32 %v1055_v38, %v1043_v29  ;;  %v1201_v38 = vld [vmem:[#allocation2 + $0xb8] sm:$0xff] }
 0xa2c   :  { %v1060_v0 = vadd.f32 %v1058_v39, %v1048_v26  ;;  %v2731_v39 = vpack.c.bf16 %v1201_v38, %v1200_v28 }
 0xa2d   :  { %v1059_v40 = vadd.f32 %v1057_v32, %v1043_v29 }
 0xa2e   :  { %v1062_v41 = vmul.f32 0.7978846, %v1060_v0 }
 0xa2f   :  { %v1061_v42 = vmul.f32 0.7978846, %v1059_v40 }
 0xa30   :  { %2898 = vtanh.f32 %v1062_v41 }
 0xa31   :  { %2900 = vtanh.f32 %v1061_v42 }
 0xa3a   :  { %v2899_v45 = vpop.eup %2898 }
 0xa3b   :  { %v2901_v48 = vpop.eup %2900  ;;  %v1066_v53 = vadd.f32 1.0, %v2899_v45 }
 0xa3c   :  { %v1065_v55 = vadd.f32 1.0, %v2901_v48  ;;  %v1184_v48 = vsub.s32 6, %v3138_v18 }
 0xa3d   :  { %v1068_v57 = vmul.f32 %v1066_v53, %v1052_v44  ;;  %v1190_v53 = vsub.s32 7, %v3138_v18 }
 0xa3e   :  { %v1067_v56 = vmul.f32 %v1065_v55, %v1051_v54  ;;  %v1185_v54 = vrot.slane %v3178_v37, %v1184_v48 }
 0xa40   :  { %2505 = vmatprep.mubr.msk.f32.mxu0 %vm603_vm14, %v1067_v56  ;;  %v1191_v56 = vrot.slane %v3178_v37, %v1190_v53  ;;  %v3495_v37 = vld [vmem:[%s3667_s5 + $0x8] sm:$0xff] }
 0xa41   :  { %2506 = vmatmul.mubr.msk.f32.vlgmr.msra.gmra.mrb[12].mxu0 %vm603_vm14, %v1068_v57 }
 0xb14   :  { %v2507_v4 = vpop.f32.mrb[12].mxu0 }
 0xb15   :  { %v1145_v62 = vpop.f32.mrb[13].mxu0  ;;  %v1151_v3 = vadd.f32 %v2507_v4, %v1072_v60 }
 0xb16   :  { %v1146_v6 = vadd.f32 %v1145_v62, %v1072_v60 }
 0xb17   :  { %v1155_v17 = vadd.f32 %v1151_v3, %v965_v61  ;;  %v1199_v61 = vld [vmem:[#allocation2 + $0xa8] sm:$0xff] }
 0xb18   :  { %v1154_v5 = vadd.f32 %v1146_v6, %v964_v46  ;;  %v2727_v33 = vpack.c.bf16 %v1199_v61, %v1198_v30 }
 0xb19   :  { %v1159_v15 = vsel %vm207_vm9, %v1155_v17, 0.0 }
 0xb1a   :  { %v1156_v10 = vsel %vm207_vm9, %v1154_v5, 0.0  ;;  %2728 = vmatprep.subr.bf16.mxu1 %v2727_v33 }
 0xb1b   :  { %1157 = vadd.xlane.f32.xlu0 %v1156_v10  ;;  %2730 = vmatpush3.bf16.msra.mxu1 %v2727_v33 }
 0xb1c   :  { %2732 = vmatprep.subr.bf16.mxu1 %v2731_v39 }
 0xb1f   :  { %1160 = vadd.xlane.f32.xlu0 %v1159_v15  ;;  %2734 = vmatpush3.bf16.msra.mxu1 %v2731_v39 }
 0xba8   :  { %v1158_v52 = vpop.xlane.xlu0 %1157 }
 0xba9   :  { %v1162_v11 = vmul.f32 0.03125, %v1158_v52 }
 0xbab   :  { %v1164_v23 = vsub.f32 %v1154_v5, %v1162_v11  ;;  %v1223_v5 = vrot.slane %v3495_v37, %v3170_v35 }
 0xbac   :  { %v1161_v21 = vpop.xlane.xlu0 %1160 }
 0xbad   :  { %v1163_v19 = vmul.f32 0.03125, %v1161_v21  ;;  %v1166_v24 = vmul.f32 %v1164_v23, %v1164_v23 }
 0xbaf   :  { %v1165_v26 = vsub.f32 %v1155_v17, %v1163_v19  ;;  %v1168_v27 = vsel %vm207_vm9, %v1166_v24, 0.0 }
 0xbb0   :  { %1169 = vadd.xlane.f32.xlu0 %v1168_v27 }
 0xbb1   :  { %v1167_v29 = vmul.f32 %v1165_v26, %v1165_v26 }
 0xbb3   :  { %v1171_v46 = vsel %vm207_vm9, %v1167_v29, 0.0 }
 0xbb4   :  { %1172 = vadd.xlane.f32.xlu0 %v1171_v46 }
 0xc3d   :  { %v1170_v32 = vpop.xlane.xlu0 %1169 }
 0xc3e   :  { %v1174_v0 = vmul.f32 0.03125, %v1170_v32 }
 0xc40   :  { %v1176_v40 = vadd.f32 1e-12, %v1174_v0 }
 0xc41   :  { %v1173_v41 = vpop.xlane.xlu0 %1172 }
 0xc42   :  { %2902 = vrsqrt.f32 %v1176_v40  ;;  %v1175_v42 = vmul.f32 0.03125, %v1173_v41 }
 0xc44   :  { %v1177_v45 = vadd.f32 1e-12, %v1175_v42 }
 0xc46   :  { %2904 = vrsqrt.f32 %v1177_v45 }
 0xc4c   :  { %v2903_v55 = vpop.eup %2902 }
 0xc4d   :  { %v1180_v44 = vmul.f32 %v2903_v55, %v1164_v23 }
 0xc4f   :  { %v1186_v57 = vmul.f32 %v1185_v54, %v1180_v44 }
 0xc50   :  { %v2905_v60 = vpop.eup %2904 }
 0xc51   :  { %v1181_v4 = vmul.f32 %v2905_v60, %v1165_v26  ;;  %v3474_v62 = vadd.f32 %v1191_v56, %v1186_v57 }
 0xc53   :  { %v1187_v3 = vmul.f32 %v1185_v54, %v1181_v4  ;;  %2199 = vst.msk [vmem:[%s3668_s6 + $0x10] sm:$0xff] %vm207_vm9, %v3474_v62  ;;  %2516 = vmatprep.mubr.msk.f32.mxu1 %vm207_vm9, %v3474_v62 }
 0xc55   :  { %v3483_v6 = vadd.f32 %v1191_v56, %v1187_v3 }
 0xc57   :  { %2200 = vst.msk [vmem:[%s3668_s6 + $0x18] sm:$0xff] %vm207_vm9, %v3483_v6  ;;  %2517 = vmatmul.mubr.msk.f32.vlgmr.msra.gmra.mrb[12].mxu1 %vm207_vm9, %v3483_v6 }
 0xd2a   :  { %v2518_v10 = vpop.f32.mrb[12].mxu1 }
 0xd2b   :  { %v1302_v17 = vadd.f32 %v2518_v10, %v1223_v5  ;;  %v1296_v15 = vpop.f32.mrb[13].mxu1 }
 0xd2c   :  { %v1297_v52 = vadd.f32 %v1296_v15, %v1223_v5 }
 0xd2d   :  { %v1306_v27 = vmul.f32 %v3251_v63, %v1302_v17  ;;  %v1308_v46 = vmul.f32 %v3268_v7, %v1302_v17  ;;  %v1310_v61 = vmul.f32 %v3283_v12, %v1302_v17  ;;  %v1312_v33 = vmul.f32 %v3296_v16, %v1302_v17 }
 0xd2e   :  { %v3499_v11 = vpack.i.bf16 %v1302_v17, %v1297_v52  ;;  %v1305_v23 = vmul.f32 %v3187_v43, %v1297_v52  ;;  %v1307_v29 = vmul.f32 %v3254_v1, %v1297_v52  ;;  %v1309_v30 = vmul.f32 %v3272_v8, %v1297_v52 }
 0xd2f   :  { %v1311_v51 = vmul.f32 %v3287_v13, %v1297_v52 }
 0xd30   :  { %2848 = vrot.lane.b32.xlu0 %v3499_v11, %s3009_s24  ;;  %2535 = vmatprep.mubr.msk.f32.mxu1 %vm207_vm9, %v1305_v23  ;;  %s2138_s24 = sshll.u32 %s3017_s23, 4  ;;  %s2139_s24 = int_to_ptr.vmem [resolvable:$true] %s2138_s24 }
 0xd31   :  { %p2980_p9 = scmp.lt.s32.totalorder %s2139_s24, %s2139_s24 }
 0xda2   :  { %v2849_v21 = vpop.permute.xlu0 %2848 }
 0xda3   :  { %v2851_v19 = vunpack.i.h.bf16 %v2849_v21  ;;  %v2850_v24 = vunpack.i.l.bf16 %v2849_v21 }
 0xda5   :  { %v2735_v26 = vpack.c.bf16 %v2851_v19, %v2850_v24 }
 0xda7   :  { %2737 = vmatprep.subr.msk.bf16.mxu1 %vm3209_vm11, %v2735_v26 }
 0xda8   :  { %2740 = vmatpush3.bf16.xpose.msk.msra.mxu1 %vm3209_vm11, %v2735_v26 }
 0xda9   :  { %2743 = vmatprep.subr.msk.bf16.mxu1 %vm3209_vm11, %v2735_v26 }
 0xdb0   :  { %2746 = vmatpush3.bf16.xpose.msk.msra.mxu1 %vm3209_vm11, %v2735_v26 }
 0xdb1   :  { %2749 = vmatprep.subr.msk.bf16.mxu1 %vm3209_vm11, %v2735_v26 }
 0xdb8   :  { %2752 = vmatpush3.bf16.xpose.msk.msra.mxu1 %vm3209_vm11, %v2735_v26 }
 0xdb9   :  { %2755 = vmatprep.subr.msk.bf16.mxu1 %vm3209_vm11, %v2735_v26 }
 0xdc0   :  { %2758 = vmatpush3.bf16.xpose.msk.msra.mxu1 %vm3209_vm11, %v2735_v26  ;;  %vm3016_vm11 = vmmov 0  }
 0xdc7   :  { %2536 = vmatmul.mubr.msk.f32.vlgmr.msra.gmra.mrb[14].mxu1 %vm207_vm9, %v1306_v27 }
 0xdc8   :  { %2538 = vmatprep.mubr.msk.f32.mxu1 %vm207_vm9, %v1307_v29 }
 0xdcb   :  { %2539 = vmatmul.mubr.msk.f32.gmra.mrb[16].mxu1 %vm207_vm9, %v1308_v46 }
 0xdcc   :  { %2541 = vmatprep.mubr.msk.f32.mxu1 %vm207_vm9, %v1309_v30 }
 0xdcf   :  { %2542 = vmatmul.mubr.msk.f32.gmra.mrb[18].mxu1 %vm207_vm9, %v1310_v61 }
 0xdd0   :  { %2544 = vmatprep.mubr.msk.f32.mxu1 %vm207_vm9, %v1311_v51 }
 0xdd3   :  { %2545 = vmatmul.mubr.msk.f32.gmra.mrb[20].mxu1 %vm207_vm9, %v1312_v33 }
 0xe9a   :  { %v2537_v28 = vpop.f32.mrb[14].mxu1 }
 0xe9b   :  { %v1419_v38 = vadd.f32 %v2537_v28, %v3326_v31  ;;  %v1413_v39 = vpop.f32.mrb[15].mxu1 }
 0xe9c   :  { %v1414_v32 = vadd.f32 %v1413_v39, %v3329_v47 }
 0xe9d   :  { %v1455_v0 = vsel %vm603_vm14, %v1419_v38, -inf }
 0xe9e   :  { %1456 = vmax.xlane.f32.xlu1 %v1455_v0  ;;  %v2540_v40 = vpop.f32.mrb[16].mxu1  ;;  %v1452_v54 = vsel %vm603_vm14, %v1414_v32, -inf }
 0xe9f   :  { %v1423_v41 = vpop.f32.mrb[17].mxu1  ;;  %v1429_v45 = vadd.f32 %v2540_v40, %v3367_v2 }
 0xea0   :  { %v1424_v42 = vadd.f32 %v1423_v41, %v3354_v58 }
 0xea1   :  { %v1461_v47 = vsel %vm603_vm14, %v1429_v45, -inf }
 0xea2   :  { %v2543_v55 = vpop.f32.mrb[18].mxu1  ;;  %1453 = vmax.xlane.f32.xlu1 %v1452_v54  ;;  %v1458_v44 = vsel %vm603_vm14, %v1424_v42, -inf }
 0xea3   :  { %v1433_v56 = vpop.f32.mrb[19].mxu1  ;;  %1459 = vmax.xlane.f32.xlu0 %v1458_v44  ;;  %v1439_v31 = vadd.f32 %v2543_v55, %v3388_v14 }
 0xea4   :  { %v1434_v4 = vadd.f32 %v1433_v56, %v3380_v9 }
 0xea5   :  { %v1467_v58 = vsel %vm603_vm14, %v1439_v31, -inf }
 0xea6   :  { %v2546_v57 = vpop.f32.mrb[20].mxu1  ;;  %1462 = vmax.xlane.f32.xlu1 %v1461_v47  ;;  %v1464_v3 = vsel %vm603_vm14, %v1434_v4, -inf }
 0xea7   :  { %v1443_v60 = vpop.f32.mrb[21].mxu1  ;;  %v1449_v5 = vadd.f32 %v2546_v57, %v3398_v25 }
 0xea8   :  { %v1444_v2 = vadd.f32 %v1443_v60, %v3395_v36 }
 0xea9   :  { %v1473_v14 = vsel %vm603_vm14, %v1449_v5, -inf }
 0xeaa   :  { %1468 = vmax.xlane.f32.xlu1 %v1467_v58  ;;  %v1470_v10 = vsel %vm603_vm14, %v1444_v2, -inf }
 0xeae   :  { %1465 = vmax.xlane.f32.xlu1 %v1464_v3 }
 0xeb2   :  { %1471 = vmax.xlane.f32.xlu1 %v1470_v10 }
 0xeb6   :  { %1474 = vmax.xlane.f32.xlu1 %v1473_v14 }
 0xf2b   :  { %v1457_v17 = vpop.xlane.xlu1 %1456 }
 0xf2c   :  { %v1477_v15 = vsub.f32 %v1419_v38, %v1457_v17 }
 0xf2e   :  { %v1486_v52 = vmul.f32 1.442695, %v1477_v15 }
 0xf2f   :  { %v1454_v9 = vpop.xlane.xlu1 %1453 }
 0xf30   :  { %2906 = vpow2.f32 %v1486_v52  ;;  %v1476_v23 = vsub.f32 %v1414_v32, %v1454_v9  ;;  %v1460_v21 = vpop.xlane.xlu0 %1459 }
 0xf31   :  { %v1478_v19 = vsub.f32 %v1424_v42, %v1460_v21 }
 0xf32   :  { %v1484_v36 = vmul.f32 1.442695, %v1476_v23 }
 0xf33   :  { %v1488_v24 = vmul.f32 1.442695, %v1478_v19  ;;  %v1463_v26 = vpop.xlane.xlu1 %1462 }
 0xf34   :  { %2908 = vpow2.f32 %v1484_v36  ;;  %v1479_v27 = vsub.f32 %v1429_v45, %v1463_v26 }
 0xf35   :  { %2910 = vpow2.f32 %v1488_v24 }
 0xf36   :  { %v1490_v25 = vmul.f32 1.442695, %v1479_v27 }
 0xf37   :  { %v1469_v29 = vpop.xlane.xlu1 %1468 }
 0xf38   :  { %2912 = vpow2.f32 %v1490_v25  ;;  %v1481_v46 = vsub.f32 %v1439_v31, %v1469_v29 }
 0xf3a   :  { %v3551_v30 = vpop.eup %2906  ;;  %v1494_v61 = vmul.f32 1.442695, %v1481_v46 }
 0xf3b   :  { %v1466_v51 = vpop.xlane.xlu1 %1465  ;;  %v1503_v33 = vsel %vm603_vm14, %v3551_v30, 0.0 }
 0xf3c   :  { %2914 = vpow2.f32 %v1494_v61  ;;  %v1480_v28 = vsub.f32 %v1434_v4, %v1466_v51  ;;  %1504 = vadd.xlane.f32.xlu1 %v1503_v33 }
 0xf3e   :  { %v2909_v38 = vpop.eup %2908  ;;  %v1492_v39 = vmul.f32 1.442695, %v1480_v28 }
 0xf3f   :  { %v1472_v32 = vpop.xlane.xlu1 %1471  ;;  %v1500_v0 = vsel %vm603_vm14, %v2909_v38, 0.0  ;;  %v3556_v40 = vpop.eup %2910 }
 0xf40   :  { %2916 = vpow2.f32 %v1492_v39  ;;  %v1482_v41 = vsub.f32 %v1444_v2, %v1472_v32  ;;  %1501 = vadd.xlane.f32.xlu1 %v1500_v0  ;;  %v1506_v55 = vsel %vm603_vm14, %v3556_v40, 0.0 }
 0xf42   :  { %v3558_v42 = vpop.eup %2912  ;;  %v1496_v45 = vmul.f32 1.442695, %v1482_v41 }
 0xf43   :  { %v1475_v54 = vpop.xlane.xlu1 %1474  ;;  %v1509_v44 = vsel %vm603_vm14, %v3558_v42, 0.0 }
 0xf44   :  { %2918 = vpow2.f32 %v1496_v45  ;;  %v1483_v56 = vsub.f32 %v1449_v5, %v1475_v54  ;;  %1507 = vadd.xlane.f32.xlu1 %v1506_v55  ;;  %1510 = vadd.xlane.f32.xlu0 %v1509_v44  ;;  %v1202_v45 = vld [vmem:[#allocation2 + $0xc0] sm:$0xff]  ;;  %v1203_v54 = vld [vmem:[#allocation2 + $0xc8] sm:$0xff]  ;;  %v1204_v55 = vld [vmem:[#allocation2 + $0xd0] sm:$0xff] }
 0xf45   :  { %v1205_v44 = vld [vmem:[#allocation2 + $0xd8] sm:$0xff] }
 0xf46   :  { %v2915_v31 = vpop.eup %2914  ;;  %v1498_v47 = vmul.f32 1.442695, %v1483_v56  ;;  %v2779_v56 = vpack.c.bf16 %v1205_v44, %v1204_v55 }
 0xf47   :  { %v1515_v57 = vsel %vm603_vm14, %v2915_v31, 0.0 }
 0xf48   :  { %2920 = vpow2.f32 %v1498_v47  ;;  %1516 = vadd.xlane.f32.xlu0 %v1515_v57 }
 0xf4a   :  { %v2917_v60 = vpop.eup %2916 }
 0xf4b   :  { %v1512_v4 = vsel %vm603_vm14, %v2917_v60, 0.0 }
 0xf4c   :  { %1513 = vadd.xlane.f32.xlu1 %v1512_v4 }
 0xf4e   :  { %v2919_v58 = vpop.eup %2918 }
 0xf4f   :  { %v1518_v2 = vsel %vm603_vm14, %v2919_v58, 0.0 }
 0xf50   :  { %1519 = vadd.xlane.f32.xlu0 %v1518_v2 }
 0xf52   :  { %v2921_v3 = vpop.eup %2920 }
 0xf53   :  { %v1521_v10 = vsel %vm603_vm14, %v2921_v3, 0.0 }
 0xf54   :  { %1522 = vadd.xlane.f32.xlu0 %v1521_v10 }
 0xf5d   :  { %2853 = vrot.lane.b32.xlu1 %v3499_v11, %s3014_s1 }
 0xfc9   :  { %v1505_v5 = vpop.xlane.xlu1 %1504 }
 0xfcd   :  { %v1502_v14 = vpop.xlane.xlu1 %1501 }
 0xfce   :  { %2922 = vrcp.f32 %v1502_v14 }
 0xfcf   :  { %2924 = vrcp.f32 %v1505_v5 }
 0xfd1   :  { %v1508_v17 = vpop.xlane.xlu1 %1507  ;;  %v1511_v23 = vpop.xlane.xlu0 %1510 }
 0xfd2   :  { %2926 = vrcp.f32 %v1508_v17 }
 0xfd3   :  { %2928 = vrcp.f32 %v1511_v23 }
 0xfd5   :  { %v1517_v26 = vpop.xlane.xlu0 %1516 }
 0xfd8   :  { %v2923_v15 = vpop.eup %2922 }
 0xfd9   :  { %v1514_v52 = vpop.xlane.xlu1 %1513  ;;  %v1525_v9 = vmul.f32 %v2923_v15, %v2909_v38  ;;  %v2925_v25 = vpop.eup %2924 }
 0xfda   :  { %2930 = vrcp.f32 %v1514_v52  ;;  %v1527_v46 = vmul.f32 %v2925_v25, %v3551_v30 }
 0xfdb   :  { %2563 = vmatprep.mubr.msk.f32.mxu0 %vm603_vm14, %v1525_v9  ;;  %2932 = vrcp.f32 %v1517_v26 }
 0xfdc   :  { %v2927_v29 = vpop.eup %2926 }
 0xfdd   :  { %v2854_v21 = vpop.permute.xlu1 %2853  ;;  %v1520_v11 = vpop.xlane.xlu0 %1519  ;;  %v1529_v51 = vmul.f32 %v2927_v29, %v3556_v40 }
 0xfde   :  { %v2856_v19 = vunpack.i.h.bf16 %v2854_v21  ;;  %v2855_v36 = vunpack.i.l.bf16 %v2854_v21  ;;  %2934 = vrcp.f32 %v1520_v11  ;;  %v2929_v61 = vpop.eup %2928 }
 0xfdf   :  { %v1531_v28 = vmul.f32 %v2929_v61, %v3558_v42  ;;  %v2775_v42 = vpack.c.bf16 %v1203_v54, %v1202_v45 }
 0xfe0   :  { %v2759_v24 = vpack.c.bf16 %v2856_v19, %v2855_v36 }
 0xfe1   :  { %v1523_v27 = vpop.xlane.xlu0 %1522 }
 0xfe2   :  { %2760 = vmatprep.subr.bf16.mxu0 %v2759_v24  ;;  %2936 = vrcp.f32 %v1523_v27 }
 0xfe3   :  { %2762 = vmatpush3.bf16.msra.mxu0 %v2759_v24 }
 0xfe4   :  { %2764 = vmatprep.subr.bf16.mxu0 %v2759_v24  ;;  %v2931_v33 = vpop.eup %2930 }
 0xfe5   :  { %v2933_v38 = vpop.eup %2932  ;;  %v1533_v39 = vmul.f32 %v2931_v33, %v2917_v60 }
 0xfe6   :  { %v1535_v0 = vmul.f32 %v2933_v38, %v2915_v31 }
 0xfe7   :  { %2766 = vmatpush3.bf16.msra.mxu0 %v2759_v24 }
 0xfe8   :  { %2768 = vmatprep.subr.bf16.mxu0 %v2759_v24  ;;  %v2935_v32 = vpop.eup %2934 }
 0xfe9   :  { %v1537_v30 = vmul.f32 %v2935_v32, %v2919_v58 }
 0xfeb   :  { %2770 = vmatpush3.bf16.msra.mxu0 %v2759_v24 }
 0xfec   :  { %2772 = vmatprep.subr.bf16.mxu0 %v2759_v24  ;;  %v2937_v41 = vpop.eup %2936 }
 0xfed   :  { %v1539_v40 = vmul.f32 %v2937_v41, %v2921_v3  ;;  %v1209_v41 = vld [vmem:[#allocation2 + $0xf8] sm:$0xff] }
 0xfef   :  { %2774 = vmatpush3.bf16.msra.mxu0 %v2759_v24 }
 0xff0   :  { %2776 = vmatprep.subr.bf16.mxu0 %v2775_v42 }
 0xff2   :  { %2564 = vmatmul.mubr.msk.f32.vlgmr.msra.gmra.mrb[14].mxu0 %vm603_vm14, %v1527_v46 }
 0xff3   :  { %2566 = vmatprep.mubr.msk.f32.mxu0 %vm603_vm14, %v1529_v51  ;;  %2778 = vmatpush3.bf16.msra.mxu0 %v2775_v42 }
 0xff4   :  { %2780 = vmatprep.subr.bf16.mxu0 %v2779_v56 }
 0xff6   :  { %2567 = vmatmul.mubr.msk.f32.gmra.mrb[16].mxu0 %vm603_vm14, %v1531_v28 }
 0xff7   :  { %2569 = vmatprep.mubr.msk.f32.mxu0 %vm603_vm14, %v1533_v39  ;;  %2782 = vmatpush3.bf16.msra.mxu0 %v2779_v56  ;;  %v1206_v39 = vld [vmem:[#allocation2 + $0xe0] sm:$0xff]  ;;  %v1805_v56 = vrot.slane %v3495_v37, %v956_v49  ;;  %v1212_v49 = vld [vmem:[#allocation2 + $0x110] sm:$0xff] }
 0xffa   :  { %2570 = vmatmul.mubr.msk.f32.gmra.mrb[18].mxu0 %vm603_vm14, %v1535_v0  ;;  %v1208_v0 = vld [vmem:[#allocation2 + $0xf0] sm:$0xff] }
 0xffb   :  { %2572 = vmatprep.mubr.msk.f32.mxu0 %vm603_vm14, %v1537_v30  ;;  %v2787_v30 = vpack.c.bf16 %v1209_v41, %v1208_v0 }
 0xffe   :  { %2573 = vmatmul.mubr.msk.f32.gmra.mrb[20].mxu0 %vm603_vm14, %v1539_v40 }
0x10c5   :  { %v2565_v31 = vpop.f32.mrb[14].mxu0 }
0x10c6   :  { %v1636_v47 = vpop.f32.mrb[15].mxu0  ;;  %v1676_v60 = vmul.f32 %v2565_v31, %v3251_v63 }
0x10c7   :  { %v1675_v2 = vmul.f32 %v3187_v43, %v1636_v47 }
0x10c9   :  { %v2568_v57 = vpop.f32.mrb[16].mxu0 }
0x10ca   :  { %v1678_v4 = vmul.f32 %v2568_v57, %v3268_v7  ;;  %v1646_v58 = vpop.f32.mrb[17].mxu0  ;;  %v1811_v57 = vrot.slane %v3495_v37, %v962_v50  ;;  %v1214_v50 = vld [vmem:[#allocation2 + $0x120] sm:$0xff] }
0x10cb   :  { %v1677_v3 = vmul.f32 %v3254_v1, %v1646_v58  ;;  %v1692_v1 = vrot.slane %v3495_v37, %v3141_v20 }
0x10cc   :  { %v1684_v10 = vadd.f32 %v1678_v4, %v1676_v60 }
0x10cd   :  { %v1683_v5 = vadd.f32 %v1677_v3, %v1675_v2  ;;  %v2571_v14 = vpop.f32.mrb[18].mxu0 }
0x10ce   :  { %v1680_v17 = vmul.f32 %v2571_v14, %v3283_v12  ;;  %v1656_v15 = vpop.f32.mrb[19].mxu0  ;;  %v1211_v14 = vld [vmem:[#allocation2 + $0x108] sm:$0xff] }
0x10cf   :  { %v1679_v52 = vmul.f32 %v3272_v8, %v1656_v15  ;;  %v1213_v15 = vld [vmem:[#allocation2 + $0x118] sm:$0xff] }
0x10d0   :  { %v1686_v9 = vadd.f32 %v1684_v10, %v1680_v17 }
0x10d1   :  { %v1685_v23 = vadd.f32 %v1683_v5, %v1679_v52  ;;  %v2574_v21 = vpop.f32.mrb[20].mxu0  ;;  %v1210_v5 = vld [vmem:[#allocation2 + $0x100] sm:$0xff]  ;;  %v2795_v52 = vpack.c.bf16 %v1213_v15, %v1212_v49 }
0x10d2   :  { %v1682_v63 = vmul.f32 %v2574_v21, %v3296_v16  ;;  %v1666_v19 = vpop.f32.mrb[21].mxu0  ;;  %v2791_v17 = vpack.c.bf16 %v1211_v14, %v1210_v5  ;;  %v1216_v21 = vld [vmem:[#allocation2 + $0x130] sm:$0xff]  ;;  %v109_v5 = vld [vmem:[%s3665_s3 + $0x20] sm:$0xff]  ;;  %v110_v14 = vld [vmem:[%s3665_s3 + $0x28] sm:$0xff] }
0x10d3   :  { %v1681_v7 = vmul.f32 %v3287_v13, %v1666_v19 }
0x10d4   :  { %v1688_v36 = vadd.f32 %v1686_v9, %v1682_v63  ;;  %2792 = vmatprep.subr.bf16.mxu1 %v2791_v17  ;;  %v1215_v9 = vld [vmem:[#allocation2 + $0x128] sm:$0xff]  ;;  %v1217_v63 = vld [vmem:[#allocation2 + $0x138] sm:$0xff] }
0x10d5   :  { %v1687_v43 = vadd.f32 %v1685_v23, %v1681_v7  ;;  %2794 = vmatpush3.bf16.msra.mxu1 %v2791_v17  ;;  %v2799_v23 = vpack.c.bf16 %v1215_v9, %v1214_v50  ;;  %v2803_v19 = vpack.c.bf16 %v1217_v63, %v1216_v21  ;;  %v1817_v7 = vrot.slane %v3495_v37, %v3147_v22 }
0x10d6   :  { %2796 = vmatprep.subr.bf16.mxu1 %v2795_v52  ;;  %v2811_v17 = vpack.c.bf16 %v110_v14, %v109_v5  ;;  %v2033_v21 = vrot.slane %v3495_v37, %v1184_v48  ;;  %v2952_v48 = vld [vmem:[%s3665_s3 + $0x30] sm:$0x7] }
0x10d7   :  { %2583 = vmatprep.mubr.msk.f32.mxu0 %vm207_vm9, %v1687_v43 }
0x10d8   :  { %2584 = vmatmul.mubr.msk.f32.vlgmr.msra.gmra.mrb[22].mxu0 %vm207_vm9, %v1688_v36 }
0x10d9   :  { %2798 = vmatpush3.bf16.msra.mxu1 %v2795_v52 }
0x10da   :  { %2800 = vmatprep.subr.bf16.mxu1 %v2799_v23 }
0x10dd   :  { %2802 = vmatpush3.bf16.msra.mxu1 %v2799_v23 }
0x10de   :  { %2804 = vmatprep.subr.bf16.mxu1 %v2803_v19 }
0x10e1   :  { %2806 = vmatpush3.bf16.msra.mxu1 %v2803_v19 }
0x11ab   :  { %v2585_v12 = vpop.f32.mrb[22].mxu0 }
0x11ac   :  { %v1765_v24 = vpop.f32.mrb[23].mxu0  ;;  %v1771_v8 = vadd.f32 %v2585_v12, %v1692_v1 }
0x11ad   :  { %v1766_v26 = vadd.f32 %v1765_v24, %v1692_v1 }
0x11ae   :  { %v1775_v27 = vadd.f32 %v1771_v8, %v3483_v6  ;;  %v1207_v6 = vld [vmem:[#allocation2 + $0xe8] sm:$0xff] }
0x11af   :  { %v1774_v11 = vadd.f32 %v1766_v26, %v3474_v62  ;;  %v2783_v32 = vpack.c.bf16 %v1207_v6, %v1206_v39  ;;  %v1920_v39 = vrot.slane %v3495_v37, %v1071_v59 }
0x11b0   :  { %v1779_v13 = vsel %vm207_vm9, %v1775_v27, 0.0 }
0x11b1   :  { %v1776_v16 = vsel %vm207_vm9, %v1774_v11, 0.0  ;;  %2784 = vmatprep.subr.bf16.mxu0 %v2783_v32 }
0x11b2   :  { %1777 = vadd.xlane.f32.xlu0 %v1776_v16  ;;  %2786 = vmatpush3.bf16.msra.mxu0 %v2783_v32 }
0x11b3   :  { %2788 = vmatprep.subr.bf16.mxu0 %v2787_v30 }
0x11b6   :  { %1780 = vadd.xlane.f32.xlu0 %v1779_v13  ;;  %2790 = vmatpush3.bf16.msra.mxu0 %v2787_v30 }
0x123f   :  { %v1778_v25 = vpop.xlane.xlu0 %1777 }
0x1240   :  { %v1782_v29 = vmul.f32 0.03125, %v1778_v25 }
0x1242   :  { %v1784_v46 = vsub.f32 %v1774_v11, %v1782_v29 }
0x1243   :  { %v1781_v61 = vpop.xlane.xlu0 %1780 }
0x1244   :  { %v1783_v51 = vmul.f32 0.03125, %v1781_v61  ;;  %v1786_v20 = vmul.f32 %v1784_v46, %v1784_v46 }
0x1246   :  { %v1785_v33 = vsub.f32 %v1775_v27, %v1783_v51  ;;  %v1788_v28 = vsel %vm207_vm9, %v1786_v20, 0.0 }
0x1247   :  { %1789 = vadd.xlane.f32.xlu1 %v1788_v28 }
0x1248   :  { %v1787_v38 = vmul.f32 %v1785_v33, %v1785_v33 }
0x124a   :  { %v1791_v62 = vsel %vm207_vm9, %v1787_v38, 0.0 }
0x124b   :  { %1792 = vadd.xlane.f32.xlu0 %v1791_v62 }
0x12d4   :  { %v1790_v40 = vpop.xlane.xlu1 %1789 }
0x12d5   :  { %v1794_v45 = vmul.f32 0.03125, %v1790_v40 }
0x12d7   :  { %v1796_v54 = vadd.f32 1e-12, %v1794_v45 }
0x12d8   :  { %v1793_v42 = vpop.xlane.xlu0 %1792 }
0x12d9   :  { %2938 = vrsqrt.f32 %v1796_v54  ;;  %v1795_v55 = vmul.f32 0.03125, %v1793_v42 }
0x12db   :  { %v1797_v44 = vadd.f32 1e-12, %v1795_v55 }
0x12dd   :  { %2940 = vrsqrt.f32 %v1797_v44 }
0x12e3   :  { %v2939_v31 = vpop.eup %2938 }
0x12e4   :  { %v1800_v47 = vmul.f32 %v2939_v31, %v1784_v46 }
0x12e6   :  { %v1806_v60 = vmul.f32 %v1805_v56, %v1800_v47 }
0x12e7   :  { %v2941_v4 = vpop.eup %2940 }
0x12e8   :  { %v1801_v58 = vmul.f32 %v2941_v4, %v1785_v33  ;;  %v1812_v2 = vadd.f32 %v1811_v57, %v1806_v60 }
0x12ea   :  { %v1807_v3 = vmul.f32 %v1805_v56, %v1801_v58  ;;  %2594 = vmatprep.mubr.msk.f32.mxu0 %vm207_vm9, %v1812_v2  ;;  %v107_v58 = vld [vmem:[%s3665_s3 + $0x10] sm:$0xff] }
0x12ec   :  { %v1813_v10 = vadd.f32 %v1811_v57, %v1807_v3 }
0x12ee   :  { %2595 = vmatmul.mubr.msk.f32.vlgmr.msra.gmra.mrb[24].mxu0 %vm207_vm9, %v1813_v10 }
0x12ef   :  { %2624 = vmatprep.mubr.msk.f32.mxu0 %vm3016_vm11, %v3008_v34  ;;  %v2039_v34 = vrot.slane %v3495_v37, %v1190_v53  ;;  %v2053_v53 = vrot.slane %v2952_v48, %v3170_v35 }
0x13c1   :  { %v2596_v36 = vpop.f32.mrb[24].mxu0 }
0x13c2   :  { %v1896_v43 = vadd.f32 %v2596_v36, %v1817_v7  ;;  %v1890_v1 = vpop.f32.mrb[25].mxu0 }
0x13c3   :  { %v1891_v12 = vadd.f32 %v1890_v1, %v1817_v7 }
0x13c4   :  { %v1902_v24 = vmul.f32 0.044715, %v1896_v43  ;;  %v1900_v28 = vmul.f32 0.5, %v1896_v43 }
0x13c5   :  { %v1901_v8 = vmul.f32 0.044715, %v1891_v12  ;;  %v1899_v22 = vmul.f32 0.5, %v1891_v12 }
0x13c6   :  { %v1904_v26 = vmul.f32 %v1902_v24, %v1896_v43 }
0x13c7   :  { %v1903_v11 = vmul.f32 %v1901_v8, %v1891_v12 }
0x13c8   :  { %v1906_v16 = vmul.f32 %v1904_v26, %v1896_v43 }
0x13c9   :  { %v1905_v27 = vmul.f32 %v1903_v11, %v1891_v12 }
0x13ca   :  { %v1908_v13 = vadd.f32 %v1906_v16, %v1896_v43 }
0x13cb   :  { %v1907_v25 = vadd.f32 %v1905_v27, %v1891_v12 }
0x13cc   :  { %v1910_v29 = vmul.f32 0.7978846, %v1908_v13 }
0x13cd   :  { %v1909_v46 = vmul.f32 0.7978846, %v1907_v25 }
0x13ce   :  { %2942 = vtanh.f32 %v1910_v29 }
0x13cf   :  { %2944 = vtanh.f32 %v1909_v46 }
0x13d8   :  { %v2943_v61 = vpop.eup %2942 }
0x13d9   :  { %v2945_v51 = vpop.eup %2944  ;;  %v1914_v20 = vadd.f32 1.0, %v2943_v61 }
0x13da   :  { %v1913_v33 = vadd.f32 1.0, %v2945_v51 }
0x13db   :  { %v1916_v62 = vmul.f32 %v1914_v20, %v1900_v28 }
0x13dc   :  { %v1915_v38 = vmul.f32 %v1913_v33, %v1899_v22 }
0x13de   :  { %2613 = vmatprep.mubr.msk.f32.mxu1 %vm603_vm14, %v1915_v38 }
0x13df   :  { %2614 = vmatmul.mubr.msk.f32.vlgmr.msra.gmra.mrb[22].mxu1 %vm603_vm14, %v1916_v62 }
0x14b2   :  { %v2615_v6 = vpop.f32.mrb[22].mxu1 }
0x14b3   :  { %v1999_v32 = vadd.f32 %v2615_v6, %v1920_v39  ;;  %v1993_v0 = vpop.f32.mrb[23].mxu1 }
0x14b4   :  { %v1994_v41 = vadd.f32 %v1993_v0, %v1920_v39 }
0x14b5   :  { %v2003_v30 = vadd.f32 %v1999_v32, %v1813_v10  ;;  %v3015_v10 = vmov 0.0|0.0  }
0x14b6   :  { %v2002_v45 = vadd.f32 %v1994_v41, %v1812_v2  ;;  %v108_v2 = vld [vmem:[%s3665_s3 + $0x18] sm:$0xff]  ;;  %2807 = vmatprep.subr.bf16.mxu0 %v3015_v10 }
0x14b7   :  { %v2007_v40 = vsel %vm207_vm9, %v2003_v30, 0.0  ;;  %v2808_v3 = vpack.c.bf16 %v108_v2, %v107_v58 }
0x14b8   :  { %2008 = vadd.xlane.f32.xlu0 %v2007_v40  ;;  %v2004_v54 = vsel %vm207_vm9, %v2002_v45, 0.0 }
0x14b9   :  { %2809 = vmatpush3.bf16.msra.mxu0 %v2808_v3 }
0x14ba   :  { %2810 = vmatprep.subr.bf16.mxu0 %v3015_v10 }
0x14bc   :  { %2005 = vadd.xlane.f32.xlu0 %v2004_v54 }
0x14bd   :  { %2812 = vmatpush3.bf16.msra.mxu0 %v2811_v17 }
0x1545   :  { %v2009_v42 = vpop.xlane.xlu0 %2008 }
0x1546   :  { %v2011_v55 = vmul.f32 0.03125, %v2009_v42 }
0x1548   :  { %v2013_v44 = vsub.f32 %v2003_v30, %v2011_v55 }
0x1549   :  { %v2006_v56 = vpop.xlane.xlu0 %2005 }
0x154a   :  { %v2010_v31 = vmul.f32 0.03125, %v2006_v56  ;;  %v2015_v47 = vmul.f32 %v2013_v44, %v2013_v44 }
0x154c   :  { %v2012_v57 = vsub.f32 %v2002_v45, %v2010_v31  ;;  %v2019_v59 = vsel %vm207_vm9, %v2015_v47, 0.0 }
0x154d   :  { %2020 = vadd.xlane.f32.xlu0 %v2019_v59 }
0x154e   :  { %v2014_v60 = vmul.f32 %v2012_v57, %v2012_v57 }
0x1550   :  { %v2016_v4 = vsel %vm207_vm9, %v2014_v60, 0.0 }
0x1551   :  { %2017 = vadd.xlane.f32.xlu0 %v2016_v4 }
0x15da   :  { %v2021_v49 = vpop.xlane.xlu0 %2020 }
0x15db   :  { %v2023_v15 = vmul.f32 0.03125, %v2021_v49 }
0x15dd   :  { %v2025_v52 = vadd.f32 1e-12, %v2023_v15 }
0x15de   :  { %v2018_v50 = vpop.xlane.xlu0 %2017 }
0x15df   :  { %2946 = vrsqrt.f32 %v2025_v52  ;;  %v2022_v9 = vmul.f32 0.03125, %v2018_v50 }
0x15e1   :  { %v2024_v23 = vadd.f32 1e-12, %v2022_v9 }
0x15e3   :  { %2948 = vrsqrt.f32 %v2024_v23 }
0x15e9   :  { %v2947_v63 = vpop.eup %2946 }
0x15ea   :  { %v2029_v19 = vmul.f32 %v2947_v63, %v2013_v44 }
0x15ec   :  { %v2035_v7 = vmul.f32 %v2033_v21, %v2029_v19 }
0x15ed   :  { %v2949_v36 = vpop.eup %2948 }
0x15ee   :  { %v2028_v43 = vmul.f32 %v2949_v36, %v2012_v57  ;;  %v2041_v1 = vadd.f32 %v2039_v34, %v2035_v7 }
0x15f0   :  { %v2034_v12 = vmul.f32 %v2033_v21, %v2028_v43  ;;  %2235 = vst.msk [vmem:[%s3668_s6 + $0x28] sm:$0xff] %vm207_vm9, %v2041_v1  ;;  %v2046_v8 = vrot.slane %v2041_v1, 7 }
0x15f2   :  { %v2040_v24 = vadd.f32 %v2039_v34, %v2034_v12 }
0x15f4   :  { %2234 = vst.msk [vmem:[%s3668_s6 + $0x20] sm:$0xff] %vm207_vm9, %v2040_v24  ;;  %v2049_v18 = vsel %vm2048_vm6, %v2040_v24, %v2046_v8  ;;  %s2975_s6 = scalar_lea.vmem %s2139_s24, 32 }
0x15f5   :  { %2625 = vmatmul.mubr.msk.f32.vlgmr.msra.gmra.mrb[26].mxu0 %vm207_vm9, %v2049_v18  ;;  %p2976_p8 = scmp.ne.s32.totalorder %s2139_s24, %s2975_s6  ;;  %p2981_p10 = scmp.lt.s32.totalorder %s2975_s6, %s2975_s6 }
0x15f7   :  { %p2982_p11 = por %p2981_p10, %p2980_p9 }
0x15f9   :  { %p2983_p12 = pnand %p2982_p11, %p2976_p8 }
0x16c8   :  { %v2123_v37 = vpop.f32.mrb[26].mxu0 }
0x16c9   :  { %v2124_v26 = vadd.f32 %v2123_v37, %v2053_v53  ;;  %v2626_v11 = vpop.f32.mrb[27].mxu0 }
0x16cb   :  { %2950 = vtanh.f32 %v2124_v26 }
0x16d5   :  { %v2951_v16 = vpop.eup %2950 }
0x16d6   :  { %2129 = vst.msk [vmem:[#allocation5] sm:$0x3] %vm2128_vm13, %v2951_v16 }
0x16d7   :  { %2986 = shalt.err (!%p2983_p12)
}
0x16d8   :  { %s2987_s0 = scalar_lea.hbm %s3669_s7, 32 }
0x16d9   :  { %p2988_p13 = scmp.ne.s32.totalorder %s3669_s7, %s2987_s0  ;;  %p2991_p0 = scmp.lt.u32.totalorder %s2987_s0, %s3669_s7 }
0x16db   :  { %p2993_p1 = pnand %p2991_p0, %p2988_p13 }
0x16dd   :  { %2996 = shalt.err (!%p2993_p1)
}
0x16de   :  { %2141 = dma.vmem_to_hbm [thread:$0]  %s2139_s24, 32, %s3669_s7, [#allocation4]  }
0x16df   :  { %2999 = dma.done.wait [#allocation4], 32  }
0x16e0   :  { %3000 = vsyncadd [#allocation4], 4294967264 }
0x16e1   :  { %2147 = vsyncpa [#allocation3], 1 }
0x16e2   :  { %2148 = vsyncpa [#allocation4], 1 }

</bundles_post_ra>
